<compile_context>
chip_gen: v7x
topology: tpu7x:2x2x1
jax: 0.10.0
libtpu: 0.0.40
codegen_flags: <defaults>
</compile_context>

<pallas_src>
import numpy as np
import jax
import jax.numpy as jnp
from jax import lax
from jax.experimental import pallas as pl
from jax.experimental.pallas import tpu as pltpu

HEAD_W = 384  # 360 zero-padded to 3 * 128 lanes


# ----------------------------------------------------------------------------
# Host-side weight construction
# ----------------------------------------------------------------------------
def conv1d_band(w, L):
    """Conv1d(Cin->Cout, k=3, pad=1) as a (Cin*L, Cout*L) matrix acting on
    channel-major flattened activations: flat_in @ M == flatten(conv_out)."""
    w = np.asarray(w, np.float32)
    Cout, Cin, K = w.shape
    M = np.zeros((Cin * L, Cout * L), np.float32)
    for co in range(Cout):
        for ci in range(Cin):
            for k in range(K):
                d = k - 1                          # input index = output index + d
                for lo in range(L):
                    li = lo + d
                    if 0 <= li < L:
                        M[ci * L + li, co * L + lo] = w[co, ci, k]
    return M


def pool_perm(C, L):
    """Column permutation putting even positions first / odd second (per
    channel, channel-major) so MaxPool1d(2) == max(first half, second half)."""
    assert L % 2 == 0, "MaxPool1d(2) requires an even length at every stage"
    half = C * L // 2
    perm = np.zeros(C * L, np.int64)
    for c in range(C):
        for j in range(L // 2):
            perm[c * (L // 2) + j] = c * L + 2 * j
            perm[half + c * (L // 2) + j] = c * L + 2 * j + 1
    return perm


def pack_slab(sections, width, align=16):
    """Stack 2-D float32 sections into one (rows, width) bf16 slab.  Each
    section starts at a 16-row-aligned offset (bf16 sublane tiling) and is
    zero right-padded to `width` columns.  Returns (slab, row_offsets)."""
    offs, r = [], 0
    for s in sections:
        r = ((r + align - 1) // align) * align
        offs.append(r)
        r += s.shape[0]
    total = ((r + align - 1) // align) * align
    slab = np.zeros((total, width), np.float32)
    for off, s in zip(offs, sections):
        slab[off:off + s.shape[0], :s.shape[1]] = s
    return jnp.asarray(slab, jnp.bfloat16), offs


def init_params(key, building_height, max_people_in_floor,
                max_people_in_elevator, lift_num):
    Lf = building_height * max_people_in_floor
    Le = max_people_in_elevator
    d_in = 32 * (Lf // 4) + 16 * (Le // 4) + 16      # integer arithmetic
    ks = jax.random.split(key, 14)

    def rnd(k, shape, s=0.1):
        return (s * jax.random.normal(k, shape)).astype(jnp.float32)

    return dict(
        wf1=rnd(ks[0], (32, 2, 3)),         bf1=rnd(ks[1], (32,)),
        wf2=rnd(ks[2], (32, 32, 3)),        bf2=rnd(ks[3], (32,)),
        we1=rnd(ks[4], (16, lift_num, 3)),  be1=rnd(ks[5], (16,)),
        we2=rnd(ks[6], (16, 16, 3)),        be2=rnd(ks[7], (16,)),
        wp=rnd(ks[8], (lift_num, 16)),      bp=rnd(ks[9], (16,)),
        w1=rnd(ks[10], (d_in, 360)),        b1=rnd(ks[11], (360,)),
        w2=rnd(ks[12], (360, 1)),           b2=rnd(ks[13], (1,)),
    )


def build_slabs(params, Lf, Le, lift_num):
    """Pack all (pool-permuted) weights into 4 bf16 slabs + static row offsets."""
    p = {k: np.asarray(v.astype(jnp.float32)) for k, v in params.items()}
    L2f, L2e = Lf // 2, Le // 2
    nf, ne = 32 * (L2f // 2), 16 * (L2e // 2)

    # floor conv 1 / conv 2
    pf1 = pool_perm(32, Lf)
    sf1, of1 = pack_slab([conv1d_band(p["wf1"], Lf)[:, pf1],
                          np.repeat(p["bf1"], Lf)[pf1][None, :]], 32 * Lf)
    pf2 = pool_perm(32, L2f)
    sf2, of2 = pack_slab([conv1d_band(p["wf2"], L2f)[:, pf2],
                          np.repeat(p["bf2"], L2f)[pf2][None, :]], 32 * L2f)

    # misc slab: elevator convs + place linear + final bias
    pe1 = pool_perm(16, Le)
    pe2 = pool_perm(16, L2e)
    sm, om = pack_slab(
        [conv1d_band(p["we1"], Le)[:, pe1],
         np.repeat(p["be1"], Le)[pe1][None, :],
         conv1d_band(p["we2"], L2e)[:, pe2],
         np.repeat(p["be2"], L2e)[pe2][None, :],
         p["wp"], p["bp"][None, :], p["b2"][None, :]],
        16 * Le)

    # head slab (lane-padded to 384): W1 split by branch (cat == sum of split
    # matmuls) + b1 + w2 row.  Zero padding keeps relu(0)*0 == 0 => exact.
    w1 = p["w1"]
    sh, oh = pack_slab([w1[:nf], w1[nf:nf + ne], w1[nf + ne:],
                        p["b1"][None, :], p["w2"].T], HEAD_W)
    return (sf1, of1), (sf2, of2), (sm, om), (sh, oh)


# ----------------------------------------------------------------------------
# Pallas kernel factory
# ----------------------------------------------------------------------------
def make_critic_forward(params, Lf, Le, lift_num, block_b=None):
    assert Lf % 4 == 0 and Le % 4 == 0, "two MaxPool1d(2) stages need L % 4 == 0"
    LN = lift_num
    cf, ce = 2 * Lf, LN * Le                    # flattened input widths
    n2f, nf = 32 * (Lf // 2), 32 * (Lf // 4)
    n1e, n2e, ne = 16 * Le, 16 * (Le // 2), 16 * (Le // 4)

    (sf1, of1), (sf2, of2), (sm, om), (sh, oh) = build_slabs(params, Lf, Le, LN)
    o_wf1, o_bf1 = of1
    o_wf2, o_bf2 = of2
    o_we1, o_be1, o_we2, o_be2, o_wp, o_bp, o_b2 = om
    o_w1f, o_w1e, o_w1p, o_b1, o_w2 = oh

    def kernel(xf_ref, xe_ref, xp_ref, f1_ref, f2_ref, m_ref, h_ref, out_ref):
        def mm(a, b):                            # bf16 MXU matmul, f32 accumulate
            return jnp.dot(a.astype(jnp.bfloat16), b,
                           preferred_element_type=jnp.float32)

        def relu(v):
            return jnp.maximum(v, 0.0)

        def pool2(h):                            # MaxPool1d(2) == half-vs-half max
            half = h.shape[-1] // 2
            return jnp.maximum(h[:, :half], h[:, half:])

        # floor branch: conv -> relu -> pool -> conv -> relu -> pool
        f = relu(mm(xf_ref[...], f1_ref[o_wf1:o_wf1 + cf, :])
                 + f1_ref[o_bf1:o_bf1 + 1, :])
        f = pool2(f)
        f = relu(mm(f, f2_ref[o_wf2:o_wf2 + n2f, :])
                 + f2_ref[o_bf2:o_bf2 + 1, :])
        f = pool2(f)                                               # (bb, nf)

        # elevator branch
        e = relu(mm(xe_ref[...], m_ref[o_we1:o_we1 + ce, :n1e])
                 + m_ref[o_be1:o_be1 + 1, :n1e])
        e = pool2(e)
        e = relu(mm(e, m_ref[o_we2:o_we2 + n2e, :n2e])
                 + m_ref[o_be2:o_be2 + 1, :n2e])
        e = pool2(e)                                               # (bb, ne)

        # elevator-place branch: K=LN (tiny) linear done on the VPU, not MXU
        xp = xp_ref[...].astype(jnp.float32)                       # (bb, LN)
        pf = m_ref[o_bp:o_bp + 1, :16].astype(jnp.float32)         # (1, 16)
        for i in range(LN):                                        # static unroll
            wrow = m_ref[o_wp + i:o_wp + i + 1, :16].astype(jnp.float32)
            pf = pf + xp[:, i:i + 1] * wrow
        pfeat = relu(pf)                                           # (bb, 16)

        # head: concat([f, e, pfeat]) @ W1 == sum of split matmuls (384 lanes)
        z = relu(mm(f, h_ref[o_w1f:o_w1f + nf, :]) +
                 mm(e, h_ref[o_w1e:o_w1e + ne, :]) +
                 mm(pfeat, h_ref[o_w1p:o_w1p + 16, :]) +
                 h_ref[o_b1:o_b1 + 1, :])                          # (bb, 384)

        # final Linear(360->1): w2 . z^T contraction (last dims of both) emits
        # a lane-dense (1, bb) row directly -> unmasked 128-lane stores.
        val = lax.dot_general(h_ref[o_w2:o_w2 + 1, :], z.astype(jnp.bfloat16),
                              dimension_numbers=(((1,), (1,)), ((), ())),
                              preferred_element_type=jnp.float32)  # (1, bb)
        out_ref[...] = val + m_ref[o_b2:o_b2 + 1, :1].astype(jnp.float32)

    def forward(floor, elv, elv_place):
        B = floor.shape[0]
        # Free contiguous reshapes only; no concat, no host-side cast.
        xf = floor.reshape(B, cf)
        xe = elv.reshape(B, ce)
        xp = elv_place.reshape(B, LN)

        bb = block_b
        if bb is None:
            # One big tile per TensorCore on v7x (grid == 2); only two cheap
            # serial steps on single-TC v5e/v6e.  Cap keeps activations small.
            bb = min(1024, max(8, (((B + 1) // 2) + 7) // 8 * 8))
        grid = max(1, -(-B // bb))
        Bp = grid * bb
        if Bp != B:
            pad = ((0, Bp - B), (0, 0))
            xf, xe, xp = (jnp.pad(a, pad) for a in (xf, xe, xp))

        out = pl.pallas_call(
            kernel,
            out_shape=jax.ShapeDtypeStruct((1, Bp), jnp.float32),   # lane-dense
            grid=(grid,),
            in_specs=[
                pl.BlockSpec((bb, cf), lambda i: (i, 0)),           # floor tile
                pl.BlockSpec((bb, ce), lambda i: (i, 0)),           # elv tile
                pl.BlockSpec((bb, LN), lambda i: (i, 0)),           # place tile
                pl.BlockSpec(sf1.shape, lambda i: (0, 0)),          # weight slabs:
                pl.BlockSpec(sf2.shape, lambda i: (0, 0)),          # constant index
                pl.BlockSpec(sm.shape, lambda i: (0, 0)),           # -> fetched once
                pl.BlockSpec(sh.shape, lambda i: (0, 0)),
            ],
            out_specs=pl.BlockSpec((1, bb), lambda i: (0, i)),
            compiler_params=pltpu.CompilerParams(
                dimension_semantics=("parallel",)),                 # v7x: 2 TCs
        )(xf, xe, xp, sf1, sf2, sm, sh)
        return out[0, :B][:, None]                                  # (B, 1)

    return forward


# ----------------------------------------------------------------------------
# Pure-JAX reference (mirrors the PyTorch forward, f32 math on the params)
# ----------------------------------------------------------------------------
def critic_reference(floor, elv, elv_place, params):
    p = {k: v.astype(jnp.float32) for k, v in params.items()}
    floor = floor.astype(jnp.float32)
    elv = elv.astype(jnp.float32)
    elv_place = elv_place.astype(jnp.float32)

    def conv1d(x, w, b):
        y = jax.lax.conv_general_dilated(
            x, w, window_strides=(1,), padding=((1, 1),),
            dimension_numbers=("NCH", "OIH", "NCH"))
        return y + b[None, :, None]

    def maxpool2(x):
        B, C, L = x.shape
        return jnp.max(x.reshape(B, C, L // 2, 2), axis=-1)

    relu = lambda v: jnp.maximum(v, 0.0)
    B = floor.shape[0]
    f = maxpool2(relu(conv1d(floor, p["wf1"], p["bf1"])))
    f = maxpool2(relu(conv1d(f, p["wf2"], p["bf2"])))
    e = maxpool2(relu(conv1d(elv, p["we1"], p["be1"])))
    e = maxpool2(relu(conv1d(e, p["we2"], p["be2"])))
    ep = relu(elv_place @ p["wp"] + p["bp"])
    x = jnp.concatenate([f.reshape(B, -1), e.reshape(B, -1), ep], axis=-1)
    x = x @ p["w1"] + p["b1"]
    return relu(x) @ p["w2"] + p["b2"]


if __name__ == "__main__":
    building_height, max_people_in_floor = 4, 4
    max_people_in_elevator, lift_num, action_dim = 8, 2, 4    # action_dim unused
    B = 256                                                   # grid of 2 tiles
    Lf = building_height * max_people_in_floor                # 16
    Le = max_people_in_elevator                               # 8

    key = jax.random.PRNGKey(0)
    k_f, k_e, k_p, k_w = jax.random.split(key, 4)
    floor = jax.random.normal(k_f, (B, 2, Lf)).astype(jnp.bfloat16)
    elv = jax.random.normal(k_e, (B, lift_num, Le)).astype(jnp.bfloat16)
    elv_place = jax.random.normal(k_p, (B, lift_num)).astype(jnp.bfloat16)

    params_f32 = init_params(k_w, building_height, max_people_in_floor,
                             max_people_in_elevator, lift_num)
    params = jax.tree.map(lambda a: a.astype(jnp.bfloat16), params_f32)  # bf16 model

    critic = jax.jit(make_critic_forward(params, Lf, Le, lift_num))
    out = jax.block_until_ready(critic(floor, elv, elv_place))

    ref = critic_reference(floor, elv, elv_place, params)
    np.testing.assert_allclose(np.asarray(out), np.asarray(ref, np.float32),
                               rtol=2e-2, atol=2e-2)
    print("KERNEL_OK")
</pallas_src>

<mosaic_0001>
module attributes {stable_mosaic.version = 11 : i64} {
  func.func @kernel(%arg0: i32, %arg1: memref<128x32xbf16, #tpu.memory_space<vmem>>, %arg2: memref<128x16xbf16, #tpu.memory_space<vmem>>, %arg3: memref<128x2xbf16, #tpu.memory_space<vmem>>, %arg4: memref<48x512xbf16, #tpu.memory_space<vmem>>, %arg5: memref<272x256xbf16, #tpu.memory_space<vmem>>, %arg6: memref<160x128xbf16, #tpu.memory_space<vmem>>, %arg7: memref<208x384xbf16, #tpu.memory_space<vmem>>, %arg8: memref<1x128xf32, #tpu.memory_space<vmem>>) attributes {dimension_semantics = [#tpu.dimension_semantics<parallel>], iteration_bounds = array<i64: 2>, scalar_prefetch = 0 : i64, scratch_operands = 0 : i64, tpu.core_type = #tpu.core_type<tc>, window_params = [{transform_indices = @transform_0, window_bounds = array<i64: 128, 32>}, {transform_indices = @transform_1, window_bounds = array<i64: 128, 16>}, {transform_indices = @transform_2, window_bounds = array<i64: 128, 2>}, {pipeline_mode = #tpu.pipeline_mode<synchronous>, transform_indices = @transform_3, window_bounds = array<i64: 48, 512>}, {pipeline_mode = #tpu.pipeline_mode<synchronous>, transform_indices = @transform_4, window_bounds = array<i64: 272, 256>}, {pipeline_mode = #tpu.pipeline_mode<synchronous>, transform_indices = @transform_5, window_bounds = array<i64: 160, 128>}, {pipeline_mode = #tpu.pipeline_mode<synchronous>, transform_indices = @transform_6, window_bounds = array<i64: 208, 384>}, {transform_indices = @transform_7, window_bounds = array<i64: 1, 128>}]} {
    %c0 = arith.constant 0 : index
    %c0_0 = arith.constant 0 : index
    %0 = vector.load %arg1[%c0, %c0_0] : memref<128x32xbf16, #tpu.memory_space<vmem>>, vector<128x32xbf16>
    %c0_1 = arith.constant 0 : index
    %c0_2 = arith.constant 0 : index
    %1 = vector.load %arg4[%c0_1, %c0_2] : memref<48x512xbf16, #tpu.memory_space<vmem>>, vector<32x512xbf16>
    %cst = arith.constant dense<0.000000e+00> : vector<128x512xf32>
    %2 = tpu.matmul %0, %1, %cst {dimension_numbers = #tpu.dot_dimension_numbers<[1], [0], [0], [1], [0, 0, 1, 1], [], []>} : vector<128x32xbf16>, vector<32x512xbf16>, vector<128x512xf32> -> vector<128x512xf32>
    %c32 = arith.constant 32 : index
    %c0_3 = arith.constant 0 : index
    %3 = vector.load %arg4[%c32, %c0_3] : memref<48x512xbf16, #tpu.memory_space<vmem>>, vector<1x512xbf16>
    %4 = arith.extf %3 : vector<1x512xbf16> to vector<1x512xf32>
    %5 = vector.broadcast %4 : vector<1x512xf32> to vector<128x512xf32>
    %6 = arith.addf %2, %5 : vector<128x512xf32>
    %cst_4 = arith.constant 0.000000e+00 : f32
    %7 = vector.broadcast %cst_4 : f32 to vector<128x512xf32>
    %8 = arith.maximumf %6, %7 : vector<128x512xf32>
    %9 = vector.extract_strided_slice %8 {offsets = [0, 0], sizes = [128, 256], strides = [1, 1]} : vector<128x512xf32> to vector<128x256xf32>
    %10 = vector.extract_strided_slice %8 {offsets = [0, 256], sizes = [128, 256], strides = [1, 1]} : vector<128x512xf32> to vector<128x256xf32>
    %11 = arith.maximumf %9, %10 : vector<128x256xf32>
    %c0_5 = arith.constant 0 : index
    %c0_6 = arith.constant 0 : index
    %12 = vector.load %arg5[%c0_5, %c0_6] : memref<272x256xbf16, #tpu.memory_space<vmem>>, vector<256x256xbf16>
    %13 = arith.truncf %11 : vector<128x256xf32> to vector<128x256xbf16>
    %cst_7 = arith.constant dense<0.000000e+00> : vector<128x256xf32>
    %14 = tpu.matmul %13, %12, %cst_7 {dimension_numbers = #tpu.dot_dimension_numbers<[1], [0], [0], [1], [0, 0, 1, 1], [], []>} : vector<128x256xbf16>, vector<256x256xbf16>, vector<128x256xf32> -> vector<128x256xf32>
    %c256 = arith.constant 256 : index
    %c0_8 = arith.constant 0 : index
    %15 = vector.load %arg5[%c256, %c0_8] : memref<272x256xbf16, #tpu.memory_space<vmem>>, vector<1x256xbf16>
    %16 = arith.extf %15 : vector<1x256xbf16> to vector<1x256xf32>
    %17 = vector.broadcast %16 : vector<1x256xf32> to vector<128x256xf32>
    %18 = arith.addf %14, %17 : vector<128x256xf32>
    %cst_9 = arith.constant 0.000000e+00 : f32
    %19 = vector.broadcast %cst_9 : f32 to vector<128x256xf32>
    %20 = arith.maximumf %18, %19 : vector<128x256xf32>
    %21 = vector.extract_strided_slice %20 {offsets = [0, 0], sizes = [128, 128], strides = [1, 1]} : vector<128x256xf32> to vector<128x128xf32>
    %22 = vector.extract_strided_slice %20 {offsets = [0, 128], sizes = [128, 128], strides = [1, 1]} : vector<128x256xf32> to vector<128x128xf32>
    %23 = arith.maximumf %21, %22 : vector<128x128xf32>
    %c0_10 = arith.constant 0 : index
    %c0_11 = arith.constant 0 : index
    %24 = vector.load %arg2[%c0_10, %c0_11] : memref<128x16xbf16, #tpu.memory_space<vmem>>, vector<128x16xbf16>
    %c0_12 = arith.constant 0 : index
    %c0_13 = arith.constant 0 : index
    %25 = vector.load %arg6[%c0_12, %c0_13] : memref<160x128xbf16, #tpu.memory_space<vmem>>, vector<16x128xbf16>
    %cst_14 = arith.constant dense<0.000000e+00> : vector<128x128xf32>
    %26 = tpu.matmul %24, %25, %cst_14 {dimension_numbers = #tpu.dot_dimension_numbers<[1], [0], [0], [1], [0, 0, 1, 1], [], []>} : vector<128x16xbf16>, vector<16x128xbf16>, vector<128x128xf32> -> vector<128x128xf32>
    %c16 = arith.constant 16 : index
    %c0_15 = arith.constant 0 : index
    %27 = vector.load %arg6[%c16, %c0_15] : memref<160x128xbf16, #tpu.memory_space<vmem>>, vector<1x128xbf16>
    %28 = arith.extf %27 : vector<1x128xbf16> to vector<1x128xf32>
    %29 = vector.broadcast %28 : vector<1x128xf32> to vector<128x128xf32>
    %30 = arith.addf %26, %29 : vector<128x128xf32>
    %cst_16 = arith.constant 0.000000e+00 : f32
    %31 = vector.broadcast %cst_16 : f32 to vector<128x128xf32>
    %32 = arith.maximumf %30, %31 : vector<128x128xf32>
    %33 = vector.extract_strided_slice %32 {offsets = [0, 0], sizes = [128, 64], strides = [1, 1]} : vector<128x128xf32> to vector<128x64xf32>
    %34 = vector.extract_strided_slice %32 {offsets = [0, 64], sizes = [128, 64], strides = [1, 1]} : vector<128x128xf32> to vector<128x64xf32>
    %35 = arith.maximumf %33, %34 : vector<128x64xf32>
    %c32_17 = arith.constant 32 : index
    %c0_18 = arith.constant 0 : index
    %36 = vector.load %arg6[%c32_17, %c0_18] : memref<160x128xbf16, #tpu.memory_space<vmem>>, vector<64x64xbf16>
    %37 = arith.truncf %35 : vector<128x64xf32> to vector<128x64xbf16>
    %cst_19 = arith.constant dense<0.000000e+00> : vector<128x64xf32>
    %38 = tpu.matmul %37, %36, %cst_19 {dimension_numbers = #tpu.dot_dimension_numbers<[1], [0], [0], [1], [0, 0, 1, 1], [], []>} : vector<128x64xbf16>, vector<64x64xbf16>, vector<128x64xf32> -> vector<128x64xf32>
    %c96 = arith.constant 96 : index
    %c0_20 = arith.constant 0 : index
    %39 = vector.load %arg6[%c96, %c0_20] : memref<160x128xbf16, #tpu.memory_space<vmem>>, vector<1x64xbf16>
    %40 = arith.extf %39 : vector<1x64xbf16> to vector<1x64xf32>
    %41 = vector.broadcast %40 : vector<1x64xf32> to vector<128x64xf32>
    %42 = arith.addf %38, %41 : vector<128x64xf32>
    %cst_21 = arith.constant 0.000000e+00 : f32
    %43 = vector.broadcast %cst_21 : f32 to vector<128x64xf32>
    %44 = arith.maximumf %42, %43 : vector<128x64xf32>
    %45 = vector.extract_strided_slice %44 {offsets = [0, 0], sizes = [128, 32], strides = [1, 1]} : vector<128x64xf32> to vector<128x32xf32>
    %46 = vector.extract_strided_slice %44 {offsets = [0, 32], sizes = [128, 32], strides = [1, 1]} : vector<128x64xf32> to vector<128x32xf32>
    %47 = arith.maximumf %45, %46 : vector<128x32xf32>
    %c0_22 = arith.constant 0 : index
    %c0_23 = arith.constant 0 : index
    %48 = vector.load %arg3[%c0_22, %c0_23] : memref<128x2xbf16, #tpu.memory_space<vmem>>, vector<128x2xbf16>
    %49 = arith.extf %48 : vector<128x2xbf16> to vector<128x2xf32>
    %c128 = arith.constant 128 : index
    %c0_24 = arith.constant 0 : index
    %50 = vector.load %arg6[%c128, %c0_24] : memref<160x128xbf16, #tpu.memory_space<vmem>>, vector<1x16xbf16>
    %51 = arith.extf %50 : vector<1x16xbf16> to vector<1x16xf32>
    %c112 = arith.constant 112 : index
    %c0_25 = arith.constant 0 : index
    %52 = vector.load %arg6[%c112, %c0_25] : memref<160x128xbf16, #tpu.memory_space<vmem>>, vector<1x16xbf16>
    %53 = arith.extf %52 : vector<1x16xbf16> to vector<1x16xf32>
    %54 = vector.extract_strided_slice %49 {offsets = [0, 0], sizes = [128, 1], strides = [1, 1]} : vector<128x2xf32> to vector<128x1xf32>
    %55 = vector.broadcast %54 : vector<128x1xf32> to vector<128x16xf32>
    %56 = vector.broadcast %53 : vector<1x16xf32> to vector<128x16xf32>
    %57 = arith.mulf %55, %56 : vector<128x16xf32>
    %58 = vector.broadcast %51 : vector<1x16xf32> to vector<128x16xf32>
    %59 = arith.addf %58, %57 : vector<128x16xf32>
    %c113 = arith.constant 113 : index
    %c0_26 = arith.constant 0 : index
    %60 = vector.load %arg6[%c113, %c0_26] : memref<160x128xbf16, #tpu.memory_space<vmem>>, vector<1x16xbf16>
    %61 = arith.extf %60 : vector<1x16xbf16> to vector<1x16xf32>
    %62 = vector.extract_strided_slice %49 {offsets = [0, 1], sizes = [128, 1], strides = [1, 1]} : vector<128x2xf32> to vector<128x1xf32>
    %63 = vector.broadcast %62 : vector<128x1xf32> to vector<128x16xf32>
    %64 = vector.broadcast %61 : vector<1x16xf32> to vector<128x16xf32>
    %65 = arith.mulf %63, %64 : vector<128x16xf32>
    %66 = arith.addf %59, %65 : vector<128x16xf32>
    %cst_27 = arith.constant 0.000000e+00 : f32
    %67 = vector.broadcast %cst_27 : f32 to vector<128x16xf32>
    %68 = arith.maximumf %66, %67 : vector<128x16xf32>
    %c0_28 = arith.constant 0 : index
    %c0_29 = arith.constant 0 : index
    %69 = vector.load %arg7[%c0_28, %c0_29] : memref<208x384xbf16, #tpu.memory_space<vmem>>, vector<128x384xbf16>
    %70 = arith.truncf %23 : vector<128x128xf32> to vector<128x128xbf16>
    %cst_30 = arith.constant dense<0.000000e+00> : vector<128x384xf32>
    %71 = tpu.matmul %70, %69, %cst_30 {dimension_numbers = #tpu.dot_dimension_numbers<[1], [0], [0], [1], [0, 0, 1, 1], [], []>} : vector<128x128xbf16>, vector<128x384xbf16>, vector<128x384xf32> -> vector<128x384xf32>
    %c128_31 = arith.constant 128 : index
    %c0_32 = arith.constant 0 : index
    %72 = vector.load %arg7[%c128_31, %c0_32] : memref<208x384xbf16, #tpu.memory_space<vmem>>, vector<32x384xbf16>
    %73 = arith.truncf %47 : vector<128x32xf32> to vector<128x32xbf16>
    %cst_33 = arith.constant dense<0.000000e+00> : vector<128x384xf32>
    %74 = tpu.matmul %73, %72, %cst_33 {dimension_numbers = #tpu.dot_dimension_numbers<[1], [0], [0], [1], [0, 0, 1, 1], [], []>} : vector<128x32xbf16>, vector<32x384xbf16>, vector<128x384xf32> -> vector<128x384xf32>
    %75 = arith.addf %71, %74 : vector<128x384xf32>
    %c160 = arith.constant 160 : index
    %c0_34 = arith.constant 0 : index
    %76 = vector.load %arg7[%c160, %c0_34] : memref<208x384xbf16, #tpu.memory_space<vmem>>, vector<16x384xbf16>
    %77 = arith.truncf %68 : vector<128x16xf32> to vector<128x16xbf16>
    %cst_35 = arith.constant dense<0.000000e+00> : vector<128x384xf32>
    %78 = tpu.matmul %77, %76, %cst_35 {dimension_numbers = #tpu.dot_dimension_numbers<[1], [0], [0], [1], [0, 0, 1, 1], [], []>} : vector<128x16xbf16>, vector<16x384xbf16>, vector<128x384xf32> -> vector<128x384xf32>
    %79 = arith.addf %75, %78 : vector<128x384xf32>
    %c176 = arith.constant 176 : index
    %c0_36 = arith.constant 0 : index
    %80 = vector.load %arg7[%c176, %c0_36] : memref<208x384xbf16, #tpu.memory_space<vmem>>, vector<1x384xbf16>
    %81 = arith.extf %80 : vector<1x384xbf16> to vector<1x384xf32>
    %82 = vector.broadcast %81 : vector<1x384xf32> to vector<128x384xf32>
    %83 = arith.addf %79, %82 : vector<128x384xf32>
    %cst_37 = arith.constant 0.000000e+00 : f32
    %84 = vector.broadcast %cst_37 : f32 to vector<128x384xf32>
    %85 = arith.maximumf %83, %84 : vector<128x384xf32>
    %c192 = arith.constant 192 : index
    %c0_38 = arith.constant 0 : index
    %86 = vector.load %arg7[%c192, %c0_38] : memref<208x384xbf16, #tpu.memory_space<vmem>>, vector<1x384xbf16>
    %87 = arith.truncf %85 : vector<128x384xf32> to vector<128x384xbf16>
    %cst_39 = arith.constant dense<0.000000e+00> : vector<1x128xf32>
    %88 = tpu.matmul %86, %87, %cst_39 {dimension_numbers = #tpu.dot_dimension_numbers<[1], [1], [0], [0], [0, 0, 1, 0], [], []>} : vector<1x384xbf16>, vector<128x384xbf16>, vector<1x128xf32> -> vector<1x128xf32>
    %c144 = arith.constant 144 : index
    %c0_40 = arith.constant 0 : index
    %89 = vector.load %arg6[%c144, %c0_40] : memref<160x128xbf16, #tpu.memory_space<vmem>>, vector<1x1xbf16>
    %90 = arith.extf %89 : vector<1x1xbf16> to vector<1x1xf32>
    %91 = vector.broadcast %90 : vector<1x1xf32> to vector<1x128xf32>
    %92 = arith.addf %88, %91 : vector<1x128xf32>
    %c0_41 = arith.constant 0 : index
    %c0_42 = arith.constant 0 : index
    %93 = vector.load %arg8[%c0_41, %c0_42] : memref<1x128xf32, #tpu.memory_space<vmem>>, vector<1x128xf32>
    tpu.vector_store %arg8[%c0_41, %c0_42], %92 {strides = array<i32>} : memref<1x128xf32, #tpu.memory_space<vmem>>, vector<1x128xf32>,
    return
  }
  func.func @transform_0(%arg0: i32) -> (i32, i32) {
    %c0_i32 = arith.constant 0 : i32
    %c0_i32_0 = arith.constant 0 : i32
    return %arg0, %c0_i32 : i32, i32
  }
  func.func @transform_1(%arg0: i32) -> (i32, i32) {
    %c0_i32 = arith.constant 0 : i32
    %c0_i32_0 = arith.constant 0 : i32
    return %arg0, %c0_i32 : i32, i32
  }
  func.func @transform_2(%arg0: i32) -> (i32, i32) {
    %c0_i32 = arith.constant 0 : i32
    %c0_i32_0 = arith.constant 0 : i32
    return %arg0, %c0_i32 : i32, i32
  }
  func.func @transform_3(%arg0: i32) -> (i32, i32) {
    %c0_i32 = arith.constant 0 : i32
    %c0_i32_0 = arith.constant 0 : i32
    %c0_i32_1 = arith.constant 0 : i32
    return %c0_i32, %c0_i32_0 : i32, i32
  }
  func.func @transform_4(%arg0: i32) -> (i32, i32) {
    %c0_i32 = arith.constant 0 : i32
    %c0_i32_0 = arith.constant 0 : i32
    %c0_i32_1 = arith.constant 0 : i32
    return %c0_i32, %c0_i32_0 : i32, i32
  }
  func.func @transform_5(%arg0: i32) -> (i32, i32) {
    %c0_i32 = arith.constant 0 : i32
    %c0_i32_0 = arith.constant 0 : i32
    %c0_i32_1 = arith.constant 0 : i32
    return %c0_i32, %c0_i32_0 : i32, i32
  }
  func.func @transform_6(%arg0: i32) -> (i32, i32) {
    %c0_i32 = arith.constant 0 : i32
    %c0_i32_0 = arith.constant 0 : i32
    %c0_i32_1 = arith.constant 0 : i32
    return %c0_i32, %c0_i32_0 : i32, i32
  }
  func.func @transform_7(%arg0: i32) -> (i32, i32) {
    %c0_i32 = arith.constant 0 : i32
    %c0_i32_0 = arith.constant 0 : i32
    return %c0_i32, %arg0 : i32, i32
  }
}

</mosaic_0001>

<bundles_post_ra>
// kernel: forward.1
= control target key start
LH: loop header
LB: loop body
LE: loop exit
PB: predicated region body
PF: predicated region fallthrough
CT: control target
= control target key end

     0   :  { %12 = vsyncpa [#allocation3], 0  ;;  %s5333_s0 = inlined_call_operand.vmem [shape: bf16[256,32], index: 0, kind: input, shape index: {}]   ;;  %s5334_s1 = inlined_call_operand.vmem [shape: bf16[256,16], index: 1, kind: input, shape index: {}]   ;;  %s5335_s2 = inlined_call_operand.vmem [shape: bf16[256,2], index: 2, kind: input, shape index: {}]   ;;  %s5336_s3 = inlined_call_operand.vmem [shape: bf16[48,512], index: 3, kind: input, shape index: {}]   ;;  %s5337_s4 = inlined_call_operand.vmem [shape: bf16[272,256], index: 4, kind: input, shape index: {}]   ;;  %s5338_s5 = inlined_call_operand.vmem [shape: bf16[160,128], index: 5, kind: input, shape index: {}]   ;;  %s5339_s6 = inlined_call_operand.vmem [shape: bf16[208,384], index: 6, kind: input, shape index: {}]   ;;  %s5340_s7 = inlined_call_operand.hbm [shape: f32[1,256], index: 7, kind: output, shape index: {}]  }
   0x1   :  { %14 = vsyncpa [#allocation3 + $0x1], 0  ;;  %s4268_s24 = smov 0   ;;  %s4270_s25 = smov 0  }
   0x2   :  { %s4272_s26 = smov 0   ;;  %s4274_s27 = smov 0  }
   0x3 LB: > { %s3299_s28 = sadd.s32 4294967295, %s4219_s27   ;;  %s3300_s29 = sadd.s32 4294967294, %s4219_s27   ;;  %s4219_s27 = sphi %s4274_s27, %s5346_s27   ;;  %s4215_s26 = sphi %s4272_s26, %s5345_s26   ;;  %s4211_s25 = sphi %s4270_s25, %s5344_s25   ;;  %s4207_s24 = sphi %s4268_s24, %s5343_s24  }
   0x4   : > { %s4291_s30 = sadd.s32 1, %s4219_s27   ;;  %s189_s8 = sadd.s32 1, %s4215_s26 }
   0x5   : > { %s186_s9 = ssub.s32 %s4219_s27, %s4291_s30  ;;  %p199_p0 = scmp.ne.s32.totalorder %s4215_s26, %s4211_s25 }
   0x6   : > { %p187_p1 = scmp.eq.s32.totalorder %s186_s9, 0  ;;  %p200_p2 = scmp.eq.s32.totalorder %s3299_s28, 1 }
   0x7   : > { %p205_p3 = scmp.ne.s32.totalorder %s4211_s25, %s4207_s24  ;;  %p206_p4 = scmp.eq.s32.totalorder %s3300_s29, 1 }
   0x8   : > { %s4301_s10 = scalar_select %p187_p1, %s4215_s26, %s189_s8  }
   0x9   : > { %p4303_p5 = por %p200_p2, %p199_p0  ;;  %p4307_p6 = por %p206_p4, %p205_p3 }
   0xa   : > { %p3303_p7 = scmp.ge.s32.totalorder %s4219_s27, 1  ;;  %p263_p8 = scmp.lt.s32.totalorder %s4219_s27, 3 }
   0xc   : > { %p264_p9 = pnand %p3303_p7, %p263_p8 }
   0xd   : > { %v4029_v0 = vld [vmem:[%s5336_s3 + $0x4] ss:$16 sps:$4 sm:$0xff] (!%p264_p9)   ;;  %s4316_s15 = sshll.u32 (!%p264_p9), %s3299_s28, 4  ;;  %v4031_v1 = vld [vmem:[%s5336_s3 + $0xc] ss:$16 sps:$4 sm:$0xff] (!%p264_p9)   ;;  %v4221_v2 = vmov (!%p264_p9), 0   ;;  %v353_v61 = vlaneseq (!%p264_p9) }
   0xe   : > { %267 = sbr.rel (%p264_p9) target bundleno = 1483 (0x5cb), region = 48  ;;  %506 = vmatprep.mubr.bf16.mxu0 (!%p264_p9), %v4221_v2  ;;  %619 = vmatprep.mubr.bf16.mxu1 (!%p264_p9), %v4221_v2  ;;  %p305_p10 = scmp.lt.s32.totalorder (!%p264_p9), %s4316_s15, 31  ;;  %v4033_v3 = vld [vmem:[%s5336_s3] ss:$16 sps:$4 sm:$0xff] (!%p264_p9)   ;;  %v4034_v4 = vld [vmem:[%s5336_s3 + $0x8] ss:$16 sps:$4 sm:$0xff] (!%p264_p9)  }
   0xf   : > { %474 = vmatprep.subr.bf16.mxu0 (!%p264_p9), %v4029_v0  ;;  %3936 = vset.pattern.permute.xlu0 (!%p264_p9), %v4221_v2  ;;  %v4035_v5 = vld [vmem:[%s5336_s3 + $0x24] ss:$16 sps:$4 sm:$0xff] (!%p264_p9)   ;;  %v4037_v6 = vld [vmem:[%s5336_s3 + $0x2c] ss:$16 sps:$4 sm:$0xff] (!%p264_p9)   ;;  %v4039_v7 = vld [vmem:[%s5336_s3 + $0x20] ss:$16 sps:$4 sm:$0xff] (!%p264_p9)  }
  0x10   : > { %587 = vmatprep.subr.bf16.mxu1 (!%p264_p9), %v4031_v1  ;;  %475 = vmatpush1.bf16.msra.mxu0 (!%p264_p9), %v4033_v3  ;;  %v4040_v8 = vld [vmem:[%s5336_s3 + $0x28] ss:$16 sps:$4 sm:$0xff] (!%p264_p9)   ;;  %v4042_v9 = vld [vmem:[%s5338_s5] sm:$0xff] (!%p264_p9)   ;;  %vm449_vm0 = vcmask (!%p264_p9), 261120   ;;  %v4063_v15 = vld [vmem:[%s5337_s4 + $0x14] ss:$8 sps:$4 sm:$0xff] (!%p264_p9)  }
  0x11   : > { %588 = vmatpush1.bf16.msra.mxu1 (!%p264_p9), %v4034_v4  ;;  %476 = vmatprep.subr.bf16.mxu0 (!%p264_p9), %v4035_v5  ;;  %v4058_v13 = vld [vmem:[%s5337_s4] ss:$8 sps:$4 sm:$0xff] (!%p264_p9)   ;;  %v4060_v14 = vld [vmem:[%s5337_s4 + $0x4] ss:$8 sps:$4 sm:$0xff] (!%p264_p9)   ;;  %v4061_v16 = vld [vmem:[%s5337_s4 + $0x10] ss:$8 sps:$4 sm:$0xff] (!%p264_p9)  }
  0x12   : > { %589 = vmatprep.subr.bf16.mxu1 (!%p264_p9), %v4037_v6  ;;  %v4066_v17 = vld [vmem:[%s5337_s4 + $0x24] ss:$8 sps:$4 sm:$0xff] (!%p264_p9)   ;;  %v4064_v18 = vld [vmem:[%s5337_s4 + $0x20] ss:$8 sps:$4 sm:$0xff] (!%p264_p9)   ;;  %v4069_v20 = vld [vmem:[%s5337_s4 + $0x34] ss:$8 sps:$4 sm:$0xff] (!%p264_p9)  }
  0x13   : > { %v4067_v21 = vld [vmem:[%s5337_s4 + $0x30] ss:$8 sps:$4 sm:$0xff] (!%p264_p9)   ;;  %v4072_v22 = vld [vmem:[%s5337_s4 + $0x44] ss:$8 sps:$4 sm:$0xff] (!%p264_p9)   ;;  %v4070_v23 = vld [vmem:[%s5337_s4 + $0x40] ss:$8 sps:$4 sm:$0xff] (!%p264_p9)  }
  0x14   : > { %477 = vmatpush1.bf16.msra.mxu0 (!%p264_p9), %v4039_v7  ;;  %v4075_v25 = vld [vmem:[%s5337_s4 + $0x54] ss:$8 sps:$4 sm:$0xff] (!%p264_p9)   ;;  %v4073_v26 = vld [vmem:[%s5337_s4 + $0x50] ss:$8 sps:$4 sm:$0xff] (!%p264_p9)   ;;  %v4078_v27 = vld [vmem:[%s5337_s4 + $0x64] ss:$8 sps:$4 sm:$0xff] (!%p264_p9)  }
  0x15   : > { %s306_s28 = scalar_select %p305_p10, %s4316_s15, 31  ;;  %590 = vmatpush1.bf16.msra.mxu1 %v4040_v8  ;;  %1015 = vmatprep.subr.bf16.mxu0 %v4060_v14  ;;  %v4076_v28 = vld [vmem:[%s5337_s4 + $0x60] ss:$8 sps:$4 sm:$0xff]   ;;  %v4081_v30 = vld [vmem:[%s5337_s4 + $0x74] ss:$8 sps:$4 sm:$0xff]   ;;  %vm1246_vm1 = vcmask 130048  }
  0x16   : > { %3578 = vmatprep.subr.bf16.mxu1 %v4042_v9  ;;  %v4079_v31 = vld [vmem:[%s5337_s4 + $0x70] ss:$8 sps:$4 sm:$0xff]   ;;  %v4084_v32 = vld [vmem:[%s5337_s4 + $0x84] ss:$8 sps:$4 sm:$0xff]   ;;  %v4082_v33 = vld [vmem:[%s5337_s4 + $0x80] ss:$8 sps:$4 sm:$0xff]  }
  0x17   : > { %s4344_s17 = sshll.u32 %s306_s28, 2  ;;  %v4087_v35 = vld [vmem:[%s5337_s4 + $0x94] ss:$8 sps:$4 sm:$0xff]   ;;  %v4085_v36 = vld [vmem:[%s5337_s4 + $0x90] ss:$8 sps:$4 sm:$0xff]   ;;  %v4108_v60 = vld [vmem:[%s5338_s5 + $0x20] sm:$0xff]  }
  0x18   : > { %s4353_s22 = scalar_lea.vmem %s5333_s0, %s4344_s17  ;;  %s4364_s29 = scalar_lea.vmem %s5334_s1, %s4344_s17  ;;  %v4090_v37 = vld [vmem:[%s5337_s4 + $0xa4] ss:$8 sps:$4 sm:$0xff]   ;;  %v4088_v38 = vld [vmem:[%s5337_s4 + $0xa0] ss:$8 sps:$4 sm:$0xff]   ;;  %v4093_v41 = vld [vmem:[%s5337_s4 + $0xb4] ss:$8 sps:$4 sm:$0xff]  }
  0x19   : > { %v4041_v10 = vld [vmem:[%s4353_s22] sm:$0xff]   ;;  %v4043_v11 = vld [vmem:[%s4353_s22 + $0x8] sm:$0xff]   ;;  %v4044_v12 = vld [vmem:[%s4353_s22 + $0x10] sm:$0xff]   ;;  %v4520_v62 = vshrl.u32 %v353_v61, 7  ;;  %s4222_s20 = smov 64   ;;  %vm1510_vm2 = vcmask 523264  }
  0x1a   : > { %3326 = vmatmul.mubr.msk.bf16.vlgmr.msra.gmra.mrb[0].mxu0 %vm449_vm0, %v4041_v10  ;;  %3334 = vmatmul.mubr.msk.bf16.vlgmr.msra.gmra.mrb[0].mxu1 %vm449_vm0, %v4041_v10  ;;  %v4045_v19 = vld [vmem:[%s4353_s22 + $0x18] sm:$0xff]   ;;  %v4046_v24 = vld [vmem:[%s4353_s22 + $0x20] sm:$0xff]   ;;  %v4047_v29 = vld [vmem:[%s4353_s22 + $0x28] sm:$0xff]   ;;  %vm4226_vm3 = vmmov 0   ;;  %s302_s13 = sand.u32 1, %s4211_s25  }
  0x1b   : > { %3579 = vmatpush3.bf16.msra.mxu1 %v4042_v9  ;;  %516 = vmatprep.mubr.bf16.mxu0 %v4221_v2  ;;  %v4048_v34 = vld [vmem:[%s4353_s22 + $0x30] sm:$0xff]   ;;  %v4049_v39 = vld [vmem:[%s4353_s22 + $0x38] sm:$0xff]   ;;  %v4050_v40 = vld [vmem:[%s4364_s29] sm:$0xff]   ;;  %v4529_v3 = vsub.s32 0, %v4520_v62  ;;  %s4224_s22 = smov 96   ;;  %s303_s14 = scalar_lea.vmem [#allocation2], %s302_s13 }
  0x1c   : > { %629 = vmatprep.mubr.bf16.mxu1 %v4221_v2  ;;  %1016 = vmatpush1.bf16.msra.mxu0 %v4058_v13  ;;  %v4091_v42 = vld [vmem:[%s5337_s4 + $0xb0] ss:$8 sps:$4 sm:$0xff]   ;;  %v4096_v43 = vld [vmem:[%s5337_s4 + $0xc4] ss:$8 sps:$4 sm:$0xff]   ;;  %v4094_v44 = vld [vmem:[%s5337_s4 + $0xc0] ss:$8 sps:$4 sm:$0xff]  }
  0x1d   : > { %1017 = vmatprep.subr.bf16.mxu0 %v4063_v15  ;;  %v4051_v45 = vld [vmem:[%s4364_s29 + $0x8] sm:$0xff]   ;;  %v4052_v46 = vld [vmem:[%s4364_s29 + $0x10] sm:$0xff]   ;;  %v4053_v47 = vld [vmem:[%s4364_s29 + $0x18] sm:$0xff]  }
  0x1e   : > { %v4054_v48 = vld [vmem:[%s4364_s29 + $0x20] sm:$0xff]   ;;  %v4055_v49 = vld [vmem:[%s4364_s29 + $0x28] sm:$0xff]   ;;  %v4056_v50 = vld [vmem:[%s4364_s29 + $0x30] sm:$0xff]  }
  0x1f   : > { %v4099_v51 = vld [vmem:[%s5337_s4 + $0xd4] ss:$8 sps:$4 sm:$0xff]   ;;  %v4097_v52 = vld [vmem:[%s5337_s4 + $0xd0] ss:$8 sps:$4 sm:$0xff]   ;;  %v4102_v54 = vld [vmem:[%s5337_s4 + $0xe4] ss:$8 sps:$4 sm:$0xff]  }
  0x20   : > { %1018 = vmatpush1.bf16.msra.mxu0 %v4061_v16  ;;  %v4057_v53 = vld [vmem:[%s4364_s29 + $0x38] sm:$0xff]   ;;  %v4100_v55 = vld [vmem:[%s5337_s4 + $0xe0] ss:$8 sps:$4 sm:$0xff]   ;;  %v4106_v58 = vld [vmem:[%s5338_s5 + $0x10] sm:$0xff]   ;;  %s4879_s29 = scalar_lea.vmem %s5335_s2, %s4344_s17  ;;  %s3209_s17 = scalar_lea.sflag [#allocation3], %s302_s13 }
  0x21   : > { %1019 = vmatprep.subr.bf16.mxu0 %v4066_v17  ;;  %v4105_v56 = vld [vmem:[%s5337_s4 + $0xf4] ss:$8 sps:$4 sm:$0xff]   ;;  %v4103_v57 = vld [vmem:[%s5337_s4 + $0xf0] ss:$8 sps:$4 sm:$0xff]   ;;  %3596 = vmatprep.subr.bf16.mxu1 %v4106_v58  ;;  %v347_v63 = vld [vmem:[%s5336_s3 + $0x40] sm:$0x11] }
  0x22   : > { %3327 = vmatmul.mubr.msk.bf16.gmra.mrb[4].mxu0 %vm449_vm0, %v4043_v11  ;;  %3335 = vmatmul.mubr.msk.bf16.gmra.mrb[4].mxu1 %vm449_vm0, %v4043_v11  ;;  %v4107_v59 = vld [vmem:[%s5338_s5 + $0x18] sm:$0xff]   ;;  %v348_v0 = vld [vmem:[%s5336_s3 + $0x48] sm:$0x11]  ;;  %v349_v1 = vunpack.c.l.bf16 %v347_v63  ;;  %v350_v5 = vunpack.c.h.bf16 %v347_v63 }
  0x23   : > { %526 = vmatprep.mubr.bf16.mxu0 %v4221_v2  ;;  %639 = vmatprep.mubr.bf16.mxu1 %v4221_v2  ;;  %v351_v4 = vunpack.c.l.bf16 %v348_v0  ;;  %v352_v6 = vunpack.c.h.bf16 %v348_v0 }
  0x24   : > { %1020 = vmatpush1.bf16.msra.mxu0 %v4064_v18  ;;  %v4532_v7 = vrot.slane %v349_v1, %v4529_v3  ;;  %v4538_v9 = vrot.slane %v350_v5, %v4529_v3 }
  0x25   : > { %1021 = vmatprep.subr.bf16.mxu0 %v4069_v20  ;;  %v4535_v8 = vrot.slane %v351_v4, %v4529_v3  ;;  %v4541_v10 = vrot.slane %v352_v6, %v4529_v3 }
  0x28   : > { %1022 = vmatpush1.bf16.msra.mxu0 %v4067_v21 }
  0x29   : > { %1023 = vmatprep.subr.bf16.mxu0 %v4072_v22 }
  0x2a   : > { %3328 = vmatmul.mubr.msk.bf16.gmra.mrb[8].mxu0 %vm449_vm0, %v4044_v12  ;;  %3336 = vmatmul.mubr.msk.bf16.gmra.mrb[8].mxu1 %vm449_vm0, %v4044_v12 }
  0x2b   : > { %536 = vmatprep.mubr.bf16.mxu0 %v4221_v2  ;;  %649 = vmatprep.mubr.bf16.mxu1 %v4221_v2 }
  0x2c   : > { %1024 = vmatpush1.bf16.msra.mxu0 %v4070_v23 }
  0x2d   : > { %1025 = vmatprep.subr.bf16.mxu0 %v4075_v25 }
  0x30   : > { %1026 = vmatpush1.bf16.msra.mxu0 %v4073_v26 }
  0x31   : > { %1027 = vmatprep.subr.bf16.mxu0 %v4078_v27 }
  0x32   : > { %3329 = vmatmul.mubr.msk.bf16.gmra.mrb[12].mxu0 %vm449_vm0, %v4045_v19  ;;  %3337 = vmatmul.mubr.msk.bf16.gmra.mrb[12].mxu1 %vm449_vm0, %v4045_v19 }
  0x33   : > { %546 = vmatprep.mubr.bf16.mxu0 %v4221_v2  ;;  %659 = vmatprep.mubr.bf16.mxu1 %v4221_v2 }
  0x34   : > { %1028 = vmatpush1.bf16.msra.mxu0 %v4076_v28 }
  0x35   : > { %1029 = vmatprep.subr.bf16.mxu0 %v4081_v30 }
  0x38   : > { %1030 = vmatpush1.bf16.msra.mxu0 %v4079_v31 }
  0x39   : > { %1031 = vmatprep.subr.bf16.mxu0 %v4084_v32 }
  0x3a   : > { %3330 = vmatmul.mubr.msk.bf16.gmra.mrb[16].mxu0 %vm449_vm0, %v4046_v24  ;;  %3338 = vmatmul.mubr.msk.bf16.gmra.mrb[16].mxu1 %vm449_vm0, %v4046_v24 }
  0x3b   : > { %556 = vmatprep.mubr.bf16.mxu0 %v4221_v2  ;;  %669 = vmatprep.mubr.bf16.mxu1 %v4221_v2 }
  0x3c   : > { %1032 = vmatpush1.bf16.msra.mxu0 %v4082_v33 }
  0x3d   : > { %1033 = vmatprep.subr.bf16.mxu0 %v4087_v35 }
  0x40   : > { %1034 = vmatpush1.bf16.msra.mxu0 %v4085_v36 }
  0x41   : > { %1035 = vmatprep.subr.bf16.mxu0 %v4090_v37 }
  0x42   : > { %3331 = vmatmul.mubr.msk.bf16.gmra.mrb[20].mxu0 %vm449_vm0, %v4047_v29  ;;  %3339 = vmatmul.mubr.msk.bf16.gmra.mrb[20].mxu1 %vm449_vm0, %v4047_v29 }
  0x43   : > { %566 = vmatprep.mubr.bf16.mxu0 %v4221_v2  ;;  %679 = vmatprep.mubr.bf16.mxu1 %v4221_v2 }
  0x44   : > { %1036 = vmatpush1.bf16.msra.mxu0 %v4088_v38 }
  0x45   : > { %1037 = vmatprep.subr.bf16.mxu0 %v4093_v41 }
  0x48   : > { %1038 = vmatpush1.bf16.msra.mxu0 %v4091_v42 }
  0x49   : > { %1039 = vmatprep.subr.bf16.mxu0 %v4096_v43 }
  0x4a   : > { %3332 = vmatmul.mubr.msk.bf16.gmra.mrb[24].mxu0 %vm449_vm0, %v4048_v34  ;;  %3340 = vmatmul.mubr.msk.bf16.gmra.mrb[24].mxu1 %vm449_vm0, %v4048_v34 }
  0x4b   : > { %576 = vmatprep.mubr.bf16.mxu0 %v4221_v2  ;;  %689 = vmatprep.mubr.bf16.mxu1 %v4221_v2 }
  0x4c   : > { %1040 = vmatpush1.bf16.msra.mxu0 %v4094_v44 }
  0x4d   : > { %1041 = vmatprep.subr.bf16.mxu0 %v4099_v51 }
  0x50   : > { %1042 = vmatpush1.bf16.msra.mxu0 %v4097_v52 }
  0x51   : > { %1043 = vmatprep.subr.bf16.mxu0 %v4102_v54 }
  0x52   : > { %3333 = vmatmul.mubr.msk.bf16.gmra.mrb[28].mxu0 %vm449_vm0, %v4049_v39  ;;  %3341 = vmatmul.mubr.msk.bf16.gmra.mrb[28].mxu1 %vm449_vm0, %v4049_v39 }
  0x53   : > { %3580 = vmatprep.mubr.msk.bf16.mxu1 %vm1246_vm1, %v4050_v40 }
  0x54   : > { %1044 = vmatpush1.bf16.msra.mxu0 %v4100_v55 }
  0x55   : > { %1045 = vmatprep.subr.bf16.mxu0 %v4105_v56 }
  0x58   : > { %1046 = vmatpush1.bf16.msra.mxu0 %v4103_v57 }
  0x5a   : > { %3581 = vmatmul.mubr.msk.bf16.vlgmr.msra.gmra.mrb[32].mxu1 %vm1246_vm1, %v4051_v45 }
  0x5b   : > { %3584 = vmatprep.mubr.msk.bf16.mxu1 %vm1246_vm1, %v4052_v46  ;;  %3597 = vmatpush3.bf16.msra.mxu1 %v4106_v58 }
  0x5c   : > { %3598 = vmatprep.subr.bf16.mxu1 %v4107_v59 }
  0x5f   : > { %3599 = vmatpush3.bf16.msra.mxu1 %v4107_v59 }
  0x60   : > { %3600 = vmatprep.subr.bf16.mxu1 %v4108_v60 }
  0x62   : > { %3585 = vmatmul.mubr.msk.bf16.gmra.mrb[36].mxu1 %vm1246_vm1, %v4053_v47 }
  0x63   : > { %3588 = vmatprep.mubr.msk.bf16.mxu1 %vm1246_vm1, %v4054_v48  ;;  %3601 = vmatpush3.bf16.msra.mxu1 %v4108_v60 }
  0x6a   : > { %3589 = vmatmul.mubr.msk.bf16.gmra.mrb[40].mxu1 %vm1246_vm1, %v4055_v49 }
  0x6b   : > { %3592 = vmatprep.mubr.msk.bf16.mxu1 %vm1246_vm1, %v4056_v50 }
  0x72   : > { %3593 = vmatmul.mubr.msk.bf16.gmra.mrb[44].mxu1 %vm1246_vm1, %v4057_v53 }
  0xed   : > { %v508_v11 = vpop.f32.mrb[0].mxu0  ;;  %v621_v12 = vpop.f32.mrb[0].mxu1 }
  0xee   : > { %v509_v13 = vadd.f32 %v508_v11, %v4532_v7  ;;  %v622_v14 = vadd.f32 %v621_v12, %v4535_v8  ;;  %v510_v15 = vpop.f32.mrb[1].mxu0  ;;  %v623_v16 = vpop.f32.mrb[1].mxu1 }
  0xef   : > { %v511_v17 = vadd.f32 %v510_v15, %v4538_v9  ;;  %v624_v18 = vadd.f32 %v623_v16, %v4541_v10  ;;  %v512_v19 = vpop.f32.mrb[2].mxu0  ;;  %v625_v20 = vpop.f32.mrb[2].mxu1 }
  0xf0   : > { %v700_v21 = vmax.f32 %v509_v13, 0.0  ;;  %v702_v22 = vmax.f32 %v622_v14, 0.0  ;;  %v513_v23 = vadd.f32 %v512_v19, %v4532_v7  ;;  %v626_v24 = vadd.f32 %v625_v20, %v4535_v8  ;;  %v514_v25 = vpop.f32.mrb[3].mxu0  ;;  %v627_v26 = vpop.f32.mrb[3].mxu1 }
  0xf1   : > { %v701_v27 = vmax.f32 %v511_v17, 0.0  ;;  %v703_v28 = vmax.f32 %v624_v18, 0.0  ;;  %v515_v29 = vadd.f32 %v514_v25, %v4538_v9  ;;  %v628_v30 = vadd.f32 %v627_v26, %v4541_v10 }
  0xf2   : > { %v764_v31 = vmax.f32 %v700_v21, %v702_v22  ;;  %v704_v32 = vmax.f32 %v513_v23, 0.0  ;;  %v706_v33 = vmax.f32 %v626_v24, 0.0 }
  0xf3   : > { %v765_v34 = vmax.f32 %v701_v27, %v703_v28  ;;  %v705_v35 = vmax.f32 %v515_v29, 0.0  ;;  %v707_v36 = vmax.f32 %v628_v30, 0.0 }
  0xf4   : > { %v766_v37 = vmax.f32 %v704_v32, %v706_v33 }
  0xf5   : > { %v767_v38 = vmax.f32 %v705_v35, %v707_v36  ;;  %v518_v39 = vpop.f32.mrb[4].mxu0  ;;  %v631_v40 = vpop.f32.mrb[4].mxu1 }
  0xf6   : > { %v828_v41 = vpack.c.bf16 %v766_v37, %v764_v31  ;;  %v519_v42 = vadd.f32 %v518_v39, %v4532_v7  ;;  %v632_v43 = vadd.f32 %v631_v40, %v4535_v8  ;;  %v520_v44 = vpop.f32.mrb[5].mxu0  ;;  %v633_v45 = vpop.f32.mrb[5].mxu1 }
  0xf7   : > { %v521_v46 = vadd.f32 %v520_v44, %v4538_v9  ;;  %v634_v47 = vadd.f32 %v633_v45, %v4541_v10  ;;  %v522_v48 = vpop.f32.mrb[6].mxu0  ;;  %v635_v49 = vpop.f32.mrb[6].mxu1  ;;  %v829_v50 = vpack.c.bf16 %v767_v38, %v765_v34 }
  0xf8   : > { %v708_v51 = vmax.f32 %v519_v42, 0.0  ;;  %v710_v52 = vmax.f32 %v632_v43, 0.0  ;;  %v523_v53 = vadd.f32 %v522_v48, %v4532_v7  ;;  %v636_v54 = vadd.f32 %v635_v49, %v4535_v8  ;;  %v524_v55 = vpop.f32.mrb[7].mxu0  ;;  %v637_v56 = vpop.f32.mrb[7].mxu1 }
  0xf9   : > { %v709_v57 = vmax.f32 %v521_v46, 0.0  ;;  %v711_v58 = vmax.f32 %v634_v47, 0.0  ;;  %v525_v59 = vadd.f32 %v524_v55, %v4538_v9  ;;  %v638_v60 = vadd.f32 %v637_v56, %v4541_v10  ;;  %1047 = vmatprep.mubr.bf16.mxu0 %v829_v50 }
  0xfa   : > { %v768_v61 = vmax.f32 %v708_v51, %v710_v52  ;;  %v712_v63 = vmax.f32 %v523_v53, 0.0  ;;  %v714_v0 = vmax.f32 %v636_v54, 0.0  ;;  %1048 = vmatmul.mubr.bf16.vlgmr.msra.gmra.mrb[32].mxu0 %v828_v41 }
  0xfb   : > { %v769_v1 = vmax.f32 %v709_v57, %v711_v58  ;;  %v713_v4 = vmax.f32 %v525_v59, 0.0  ;;  %v715_v5 = vmax.f32 %v638_v60, 0.0 }
  0xfc   : > { %v770_v6 = vmax.f32 %v712_v63, %v714_v0 }
  0xfd   : > { %v771_v11 = vmax.f32 %v713_v4, %v715_v5  ;;  %v528_v12 = vpop.f32.mrb[8].mxu0  ;;  %v641_v13 = vpop.f32.mrb[8].mxu1 }
  0xfe   : > { %v529_v14 = vadd.f32 %v528_v12, %v4532_v7  ;;  %v642_v15 = vadd.f32 %v641_v13, %v4535_v8  ;;  %v530_v16 = vpop.f32.mrb[9].mxu0  ;;  %v643_v17 = vpop.f32.mrb[9].mxu1  ;;  %v830_v18 = vpack.c.bf16 %v770_v6, %v768_v61 }
  0xff   : > { %v531_v19 = vadd.f32 %v530_v16, %v4538_v9  ;;  %v644_v20 = vadd.f32 %v643_v17, %v4541_v10  ;;  %v532_v21 = vpop.f32.mrb[10].mxu0  ;;  %v645_v22 = vpop.f32.mrb[10].mxu1  ;;  %v831_v23 = vpack.c.bf16 %v771_v11, %v769_v1 }
 0x100   : > { %v716_v24 = vmax.f32 %v529_v14, 0.0  ;;  %v718_v25 = vmax.f32 %v642_v15, 0.0  ;;  %v533_v26 = vadd.f32 %v532_v21, %v4532_v7  ;;  %v646_v27 = vadd.f32 %v645_v22, %v4535_v8  ;;  %v534_v28 = vpop.f32.mrb[11].mxu0  ;;  %v647_v29 = vpop.f32.mrb[11].mxu1 }
 0x101   : > { %v717_v30 = vmax.f32 %v531_v19, 0.0  ;;  %v719_v31 = vmax.f32 %v644_v20, 0.0  ;;  %v535_v32 = vadd.f32 %v534_v28, %v4538_v9  ;;  %v648_v33 = vadd.f32 %v647_v29, %v4541_v10  ;;  %1057 = vmatprep.mubr.bf16.mxu0 %v831_v23 }
 0x102   : > { %v772_v34 = vmax.f32 %v716_v24, %v718_v25  ;;  %v720_v35 = vmax.f32 %v533_v26, 0.0  ;;  %v722_v36 = vmax.f32 %v646_v27, 0.0  ;;  %1058 = vmatmul.mubr.bf16.gmra.mrb[36].mxu0 %v830_v18 }
 0x103   : > { %v773_v37 = vmax.f32 %v717_v30, %v719_v31  ;;  %v721_v38 = vmax.f32 %v535_v32, 0.0  ;;  %v723_v39 = vmax.f32 %v648_v33, 0.0 }
 0x104   : > { %v774_v40 = vmax.f32 %v720_v35, %v722_v36 }
 0x105   : > { %v775_v41 = vmax.f32 %v721_v38, %v723_v39  ;;  %v538_v42 = vpop.f32.mrb[12].mxu0  ;;  %v651_v43 = vpop.f32.mrb[12].mxu1 }
 0x106   : > { %v539_v44 = vadd.f32 %v538_v42, %v4532_v7  ;;  %v652_v45 = vadd.f32 %v651_v43, %v4535_v8  ;;  %v540_v46 = vpop.f32.mrb[13].mxu0  ;;  %v653_v47 = vpop.f32.mrb[13].mxu1  ;;  %v832_v48 = vpack.c.bf16 %v774_v40, %v772_v34 }
 0x107   : > { %v541_v49 = vadd.f32 %v540_v46, %v4538_v9  ;;  %v654_v50 = vadd.f32 %v653_v47, %v4541_v10  ;;  %v542_v51 = vpop.f32.mrb[14].mxu0  ;;  %v655_v52 = vpop.f32.mrb[14].mxu1  ;;  %v833_v53 = vpack.c.bf16 %v775_v41, %v773_v37 }
 0x108   : > { %v724_v54 = vmax.f32 %v539_v44, 0.0  ;;  %v726_v55 = vmax.f32 %v652_v45, 0.0  ;;  %v543_v56 = vadd.f32 %v542_v51, %v4532_v7  ;;  %v656_v57 = vadd.f32 %v655_v52, %v4535_v8  ;;  %v544_v58 = vpop.f32.mrb[15].mxu0  ;;  %v657_v59 = vpop.f32.mrb[15].mxu1 }
 0x109   : > { %v725_v60 = vmax.f32 %v541_v49, 0.0  ;;  %v727_v61 = vmax.f32 %v654_v50, 0.0  ;;  %v545_v63 = vadd.f32 %v544_v58, %v4538_v9  ;;  %v658_v0 = vadd.f32 %v657_v59, %v4541_v10  ;;  %1067 = vmatprep.mubr.bf16.mxu0 %v833_v53 }
 0x10a   : > { %v776_v1 = vmax.f32 %v724_v54, %v726_v55  ;;  %v728_v4 = vmax.f32 %v543_v56, 0.0  ;;  %v730_v5 = vmax.f32 %v656_v57, 0.0  ;;  %1068 = vmatmul.mubr.bf16.gmra.mrb[40].mxu0 %v832_v48 }
 0x10b   : > { %v777_v6 = vmax.f32 %v725_v60, %v727_v61  ;;  %v729_v11 = vmax.f32 %v545_v63, 0.0  ;;  %v731_v12 = vmax.f32 %v658_v0, 0.0 }
 0x10c   : > { %v778_v13 = vmax.f32 %v728_v4, %v730_v5 }
 0x10d   : > { %v779_v14 = vmax.f32 %v729_v11, %v731_v12  ;;  %v548_v15 = vpop.f32.mrb[16].mxu0  ;;  %v661_v16 = vpop.f32.mrb[16].mxu1 }
 0x10e   : > { %v549_v17 = vadd.f32 %v548_v15, %v4532_v7  ;;  %v662_v18 = vadd.f32 %v661_v16, %v4535_v8  ;;  %v550_v19 = vpop.f32.mrb[17].mxu0  ;;  %v663_v20 = vpop.f32.mrb[17].mxu1  ;;  %v834_v21 = vpack.c.bf16 %v778_v13, %v776_v1 }
 0x10f   : > { %v551_v22 = vadd.f32 %v550_v19, %v4538_v9  ;;  %v664_v23 = vadd.f32 %v663_v20, %v4541_v10  ;;  %v552_v24 = vpop.f32.mrb[18].mxu0  ;;  %v665_v25 = vpop.f32.mrb[18].mxu1  ;;  %v835_v26 = vpack.c.bf16 %v779_v14, %v777_v6 }
 0x110   : > { %v732_v27 = vmax.f32 %v549_v17, 0.0  ;;  %v734_v28 = vmax.f32 %v662_v18, 0.0  ;;  %v553_v29 = vadd.f32 %v552_v24, %v4532_v7  ;;  %v666_v30 = vadd.f32 %v665_v25, %v4535_v8  ;;  %v554_v31 = vpop.f32.mrb[19].mxu0  ;;  %v667_v32 = vpop.f32.mrb[19].mxu1 }
 0x111   : > { %v733_v33 = vmax.f32 %v551_v22, 0.0  ;;  %v735_v34 = vmax.f32 %v664_v23, 0.0  ;;  %v555_v35 = vadd.f32 %v554_v31, %v4538_v9  ;;  %v668_v36 = vadd.f32 %v667_v32, %v4541_v10  ;;  %1077 = vmatprep.mubr.bf16.mxu0 %v835_v26 }
 0x112   : > { %v780_v37 = vmax.f32 %v732_v27, %v734_v28  ;;  %v736_v38 = vmax.f32 %v553_v29, 0.0  ;;  %v738_v39 = vmax.f32 %v666_v30, 0.0  ;;  %1078 = vmatmul.mubr.bf16.gmra.mrb[44].mxu0 %v834_v21 }
 0x113   : > { %v781_v40 = vmax.f32 %v733_v33, %v735_v34  ;;  %v737_v41 = vmax.f32 %v555_v35, 0.0  ;;  %v739_v42 = vmax.f32 %v668_v36, 0.0 }
 0x114   : > { %v782_v43 = vmax.f32 %v736_v38, %v738_v39 }
 0x115   : > { %v783_v44 = vmax.f32 %v737_v41, %v739_v42  ;;  %v558_v45 = vpop.f32.mrb[20].mxu0  ;;  %v671_v46 = vpop.f32.mrb[20].mxu1 }
 0x116   : > { %v559_v47 = vadd.f32 %v558_v45, %v4532_v7  ;;  %v672_v48 = vadd.f32 %v671_v46, %v4535_v8  ;;  %v560_v49 = vpop.f32.mrb[21].mxu0  ;;  %v673_v50 = vpop.f32.mrb[21].mxu1  ;;  %v836_v51 = vpack.c.bf16 %v782_v43, %v780_v37 }
 0x117   : > { %v561_v52 = vadd.f32 %v560_v49, %v4538_v9  ;;  %v674_v53 = vadd.f32 %v673_v50, %v4541_v10  ;;  %v562_v54 = vpop.f32.mrb[22].mxu0  ;;  %v675_v55 = vpop.f32.mrb[22].mxu1  ;;  %v837_v56 = vpack.c.bf16 %v783_v44, %v781_v40 }
 0x118   : > { %v740_v57 = vmax.f32 %v559_v47, 0.0  ;;  %v742_v58 = vmax.f32 %v672_v48, 0.0  ;;  %v563_v59 = vadd.f32 %v562_v54, %v4532_v7  ;;  %v676_v60 = vadd.f32 %v675_v55, %v4535_v8  ;;  %v564_v61 = vpop.f32.mrb[23].mxu0  ;;  %v677_v63 = vpop.f32.mrb[23].mxu1  ;;  %v1194_v47 = vld [vmem:[%s5338_s5 + $0x8] sm:$0x1] }
 0x119   : > { %v741_v0 = vmax.f32 %v561_v52, 0.0  ;;  %v743_v1 = vmax.f32 %v674_v53, 0.0  ;;  %v565_v4 = vadd.f32 %v564_v61, %v4538_v9  ;;  %v678_v5 = vadd.f32 %v677_v63, %v4541_v10  ;;  %1087 = vmatprep.mubr.bf16.mxu0 %v837_v56 }
 0x11a   : > { %v784_v6 = vmax.f32 %v740_v57, %v742_v58  ;;  %v744_v11 = vmax.f32 %v563_v59, 0.0  ;;  %v746_v12 = vmax.f32 %v676_v60, 0.0  ;;  %1088 = vmatmul.mubr.bf16.gmra.mrb[48].mxu0 %v836_v51  ;;  %v1195_v61 = vunpack.c.l.bf16 %v1194_v47 }
 0x11b   : > { %v785_v13 = vmax.f32 %v741_v0, %v743_v1  ;;  %v745_v14 = vmax.f32 %v565_v4, 0.0  ;;  %v747_v15 = vmax.f32 %v678_v5, 0.0 }
 0x11c   : > { %v786_v16 = vmax.f32 %v744_v11, %v746_v12 }
 0x11d   : > { %v787_v17 = vmax.f32 %v745_v14, %v747_v15  ;;  %v568_v18 = vpop.f32.mrb[24].mxu0  ;;  %v681_v19 = vpop.f32.mrb[24].mxu1 }
 0x11e   : > { %v569_v20 = vadd.f32 %v568_v18, %v4532_v7  ;;  %v682_v21 = vadd.f32 %v681_v19, %v4535_v8  ;;  %v570_v22 = vpop.f32.mrb[25].mxu0  ;;  %v683_v23 = vpop.f32.mrb[25].mxu1  ;;  %v838_v24 = vpack.c.bf16 %v786_v16, %v784_v6 }
 0x11f   : > { %v571_v25 = vadd.f32 %v570_v22, %v4538_v9  ;;  %v684_v26 = vadd.f32 %v683_v23, %v4541_v10  ;;  %v572_v27 = vpop.f32.mrb[26].mxu0  ;;  %v685_v28 = vpop.f32.mrb[26].mxu1  ;;  %v839_v29 = vpack.c.bf16 %v787_v17, %v785_v13 }
 0x120   : > { %v748_v30 = vmax.f32 %v569_v20, 0.0  ;;  %v750_v31 = vmax.f32 %v682_v21, 0.0  ;;  %v573_v32 = vadd.f32 %v572_v27, %v4532_v7  ;;  %v686_v33 = vadd.f32 %v685_v28, %v4535_v8  ;;  %v574_v34 = vpop.f32.mrb[27].mxu0  ;;  %v687_v35 = vpop.f32.mrb[27].mxu1 }
 0x121   : > { %v749_v36 = vmax.f32 %v571_v25, 0.0  ;;  %v751_v37 = vmax.f32 %v684_v26, 0.0  ;;  %v575_v38 = vadd.f32 %v574_v34, %v4538_v9  ;;  %v688_v39 = vadd.f32 %v687_v35, %v4541_v10  ;;  %1097 = vmatprep.mubr.bf16.mxu0 %v839_v29 }
 0x122   : > { %v788_v40 = vmax.f32 %v748_v30, %v750_v31  ;;  %v752_v41 = vmax.f32 %v573_v32, 0.0  ;;  %v754_v42 = vmax.f32 %v686_v33, 0.0  ;;  %1098 = vmatmul.mubr.bf16.gmra.mrb[52].mxu0 %v838_v24 }
 0x123   : > { %v789_v43 = vmax.f32 %v749_v36, %v751_v37  ;;  %v753_v44 = vmax.f32 %v575_v38, 0.0  ;;  %v755_v45 = vmax.f32 %v688_v39, 0.0 }
 0x124   : > { %v790_v46 = vmax.f32 %v752_v41, %v754_v42 }
 0x125   : > { %v791_v48 = vmax.f32 %v753_v44, %v755_v45  ;;  %v578_v49 = vpop.f32.mrb[28].mxu0  ;;  %v691_v50 = vpop.f32.mrb[28].mxu1 }
 0x126   : > { %v579_v51 = vadd.f32 %v578_v49, %v4532_v7  ;;  %v692_v52 = vadd.f32 %v691_v50, %v4535_v8  ;;  %v580_v53 = vpop.f32.mrb[29].mxu0  ;;  %v693_v54 = vpop.f32.mrb[29].mxu1  ;;  %v840_v55 = vpack.c.bf16 %v790_v46, %v788_v40 }
 0x127   : > { %v581_v56 = vadd.f32 %v580_v53, %v4538_v9  ;;  %v694_v57 = vadd.f32 %v693_v54, %v4541_v10  ;;  %v582_v58 = vpop.f32.mrb[30].mxu0  ;;  %v695_v59 = vpop.f32.mrb[30].mxu1  ;;  %v841_v60 = vpack.c.bf16 %v791_v48, %v789_v43 }
 0x128   : > { %v756_v63 = vmax.f32 %v579_v51, 0.0  ;;  %v758_v0 = vmax.f32 %v692_v52, 0.0  ;;  %v583_v1 = vadd.f32 %v582_v58, %v4532_v7  ;;  %v696_v4 = vadd.f32 %v695_v59, %v4535_v8  ;;  %v584_v5 = vpop.f32.mrb[31].mxu0  ;;  %v697_v6 = vpop.f32.mrb[31].mxu1 }
 0x129   : > { %v757_v11 = vmax.f32 %v581_v56, 0.0  ;;  %v759_v12 = vmax.f32 %v694_v57, 0.0  ;;  %v585_v13 = vadd.f32 %v584_v5, %v4538_v9  ;;  %v698_v14 = vadd.f32 %v697_v6, %v4541_v10  ;;  %1107 = vmatprep.mubr.bf16.mxu0 %v841_v60  ;;  %v4109_v9 = vld [vmem:[%s5338_s5 + $0x28] sm:$0xff]  }
 0x12a   : > { %v792_v15 = vmax.f32 %v756_v63, %v758_v0  ;;  %v760_v16 = vmax.f32 %v583_v1, 0.0  ;;  %v762_v17 = vmax.f32 %v696_v4, 0.0  ;;  %1108 = vmatmul.mubr.bf16.gmra.mrb[56].mxu0 %v840_v55  ;;  %v4611_v7 = vrot.slane %v1195_v61, %v4529_v3  ;;  %3602 = vmatprep.subr.bf16.mxu1 %v4109_v9 }
 0x12b   : > { %v793_v18 = vmax.f32 %v757_v11, %v759_v12  ;;  %v761_v19 = vmax.f32 %v585_v13, 0.0  ;;  %v763_v20 = vmax.f32 %v698_v14, 0.0  ;;  %3603 = vmatpush3.bf16.msra.mxu1 %v4109_v9 }
 0x12c   : > { %v794_v8 = vmax.f32 %v760_v16, %v762_v17 }
 0x12d   : > { %v795_v21 = vmax.f32 %v761_v19, %v763_v20  ;;  %v3582_v22 = vpop.f32.mrb[32].mxu1 }
 0x12e   : > { %v1305_v23 = vpop.f32.mrb[33].mxu1  ;;  %v842_v24 = vpack.c.bf16 %v794_v8, %v792_v15  ;;  %v4626_v30 = vadd.f32 %v3582_v22, %v4611_v7 }
 0x12f   : > { %v4617_v10 = vadd.f32 %v1305_v23, %v4611_v7  ;;  %v3583_v25 = vpop.f32.mrb[34].mxu1  ;;  %v843_v26 = vpack.c.bf16 %v795_v21, %v793_v18 }
 0x130   : > { %v1308_v27 = vpop.f32.mrb[35].mxu1  ;;  %v4620_v28 = vadd.f32 %v3583_v25, %v4611_v7  ;;  %v1370_v37 = vmax.f32 %v4626_v30, 0.0 }
 0x131   : > { %v4623_v29 = vadd.f32 %v1308_v27, %v4611_v7  ;;  %1117 = vmatprep.mubr.bf16.mxu0 %v843_v26  ;;  %v1368_v31 = vmax.f32 %v4617_v10, 0.0 }
 0x132   : > { %1118 = vmatmul.mubr.bf16.gmra.mrb[60].mxu0 %v842_v24  ;;  %v1371_v33 = vmax.f32 %v4620_v28, 0.0 }
 0x133   : > { %v1369_v32 = vmax.f32 %v4623_v29, 0.0  ;;  %2144 = vmatprep.mubr.bf16.mxu0 %v4221_v2 }
 0x134   : > { %v3861_v43 = vpack.i.bf16 %v1371_v33, %v1370_v37 }
 0x135   : > { %v3586_v34 = vpop.f32.mrb[36].mxu1  ;;  %v3856_v35 = vpack.i.bf16 %v1369_v32, %v1368_v31 }
 0x136   : > { %v1321_v36 = vpop.f32.mrb[37].mxu1  ;;  %v4634_v38 = vadd.f32 %v3586_v34, %v4611_v7 }
 0x137   : > { %v4637_v39 = vadd.f32 %v1321_v36, %v4611_v7  ;;  %v3587_v40 = vpop.f32.mrb[38].mxu1  ;;  %3857 = vrot.lane.b32.xlu0 %v3856_v35, %s4222_s20 }
 0x138   : > { %v4641_v41 = vadd.f32 %v3587_v40, %v4611_v7  ;;  %v1324_v42 = vpop.f32.mrb[39].mxu1  ;;  %v1374_v46 = vmax.f32 %v4634_v38, 0.0 }
 0x139   : > { %v1372_v44 = vmax.f32 %v4637_v39, 0.0  ;;  %v1325_v45 = vadd.f32 %v1324_v42, %v4611_v7 }
 0x13a   : > { %v1375_v47 = vmax.f32 %v4641_v41, 0.0 }
 0x13b   : > { %v1373_v48 = vmax.f32 %v1325_v45, 0.0  ;;  %3862 = vrot.lane.b32.xlu0 %v3861_v43, %s4222_s20 }
 0x13c   : > { %v3871_v53 = vpack.i.bf16 %v1375_v47, %v1374_v46 }
 0x13d   : > { %v3590_v49 = vpop.f32.mrb[40].mxu1  ;;  %v3866_v50 = vpack.i.bf16 %v1373_v48, %v1372_v44 }
 0x13e   : > { %v4651_v51 = vadd.f32 %v3590_v49, %v4611_v7  ;;  %v1337_v52 = vpop.f32.mrb[41].mxu1 }
 0x13f   : > { %v4658_v54 = vadd.f32 %v1337_v52, %v4611_v7  ;;  %v3591_v55 = vpop.f32.mrb[42].mxu1  ;;  %3867 = vrot.lane.b32.xlu1 %v3866_v50, %s4222_s20 }
 0x140   : > { %v1378_v56 = vmax.f32 %v4651_v51, 0.0  ;;  %v4663_v57 = vadd.f32 %v3591_v55, %v4611_v7  ;;  %v1340_v58 = vpop.f32.mrb[43].mxu1 }
 0x141   : > { %v1376_v59 = vmax.f32 %v4658_v54, 0.0  ;;  %v1341_v60 = vadd.f32 %v1340_v58, %v4611_v7 }
 0x142   : > { %v1379_v61 = vmax.f32 %v4663_v57, 0.0 }
 0x143   : > { %v1377_v63 = vmax.f32 %v1341_v60, 0.0  ;;  %3872 = vrot.lane.b32.xlu1 %v3871_v53, %s4222_s20 }
 0x144   : > { %v3881_v0 = vpack.i.bf16 %v1379_v61, %v1378_v56 }
 0x145   : > { %v3876_v1 = vpack.i.bf16 %v1377_v63, %v1376_v59  ;;  %v3594_v4 = vpop.f32.mrb[44].mxu1 }
 0x146   : > { %v4674_v5 = vadd.f32 %v3594_v4, %v4611_v7  ;;  %v1353_v6 = vpop.f32.mrb[45].mxu1 }
 0x147   : > { %v4677_v11 = vadd.f32 %v1353_v6, %v4611_v7  ;;  %v3595_v12 = vpop.f32.mrb[46].mxu1  ;;  %3882 = vrot.lane.b32.xlu1 %v3881_v0, %s4222_s20  ;;  %3877 = vrot.lane.b32.xlu0 %v3876_v1, %s4222_s20 }
 0x148   : > { %v1382_v13 = vmax.f32 %v4674_v5, 0.0  ;;  %v4683_v14 = vadd.f32 %v3595_v12, %v4611_v7  ;;  %v1356_v15 = vpop.f32.mrb[47].mxu1 }
 0x149   : > { %v1380_v16 = vmax.f32 %v4677_v11, 0.0  ;;  %v1357_v17 = vadd.f32 %v1356_v15, %v4611_v7 }
 0x14a   : > { %v1383_v18 = vmax.f32 %v4683_v14, 0.0 }
 0x14b   : > { %v1381_v19 = vmax.f32 %v1357_v17, 0.0 }
 0x14c   : > { %v3891_v20 = vpack.i.bf16 %v1383_v18, %v1382_v13 }
 0x14d   : > { %v3886_v8 = vpack.i.bf16 %v1381_v19, %v1380_v16 }
 0x14e   : > { %3892 = vrot.lane.b32.xlu1 %v3891_v20, %s4222_s20 }
 0x14f   : > { %3887 = vrot.lane.b32.xlu0 %v3886_v8, %s4222_s20  ;;  %s4227_s20 = smov [#allocation2]  }
 0x150   : > { %s4161_s21 = sshll.u32 %s4227_s20, 4  ;;  %s4162_s21 = int_to_ptr.vmem [resolvable:$false] %s4161_s21 }
 0x151   : > { %s4163_s23 = scalar_lea.vmem %s4162_s21, 32 }
 0x1a9   : > { %v3858_v21 = vpop.permute.xlu0 %3857 }
 0x1aa   : > { %v3860_v22 = vunpack.i.h.bf16 %v3858_v21  ;;  %v3859_v23 = vunpack.i.l.bf16 %v3858_v21 }
 0x1ac   : > { %v1449_v24 = vmax.f32 %v1369_v32, %v3860_v22  ;;  %v1448_v9 = vmax.f32 %v1368_v31, %v3859_v23 }
 0x1ad   : > { %v3863_v10 = vpop.permute.xlu0 %3862 }
 0x1ae   : > { %v1472_v25 = vpack.c.bf16 %v1449_v24, %v1448_v9  ;;  %v3865_v7 = vunpack.i.h.bf16 %v3863_v10  ;;  %v3864_v26 = vunpack.i.l.bf16 %v3863_v10 }
 0x1b0   : > { %v1451_v27 = vmax.f32 %v1371_v33, %v3865_v7  ;;  %v1450_v29 = vmax.f32 %v1370_v37, %v3864_v26  ;;  %3604 = vmatprep.mubr.msk.bf16.mxu1 %vm1510_vm2, %v1472_v25 }
 0x1b1   : > { %v3868_v30 = vpop.permute.xlu1 %3867 }
 0x1b2   : > { %v1473_v34 = vpack.c.bf16 %v1451_v27, %v1450_v29  ;;  %v3870_v35 = vunpack.i.h.bf16 %v3868_v30  ;;  %v3869_v36 = vunpack.i.l.bf16 %v3868_v30 }
 0x1b4   : > { %v1453_v39 = vmax.f32 %v1373_v48, %v3870_v35  ;;  %v1452_v40 = vmax.f32 %v1372_v44, %v3869_v36  ;;  %3605 = vmatmul.mubr.msk.bf16.vlgmr.msra.gmra.mrb[48].mxu1 %vm1510_vm2, %v1473_v34 }
 0x1b5   : > { %v3873_v31 = vpop.permute.xlu1 %3872 }
 0x1b6   : > { %v1474_v32 = vpack.c.bf16 %v1453_v39, %v1452_v40  ;;  %v3875_v42 = vunpack.i.h.bf16 %v3873_v31  ;;  %v3874_v43 = vunpack.i.l.bf16 %v3873_v31 }
 0x1b8   : > { %v1455_v45 = vmax.f32 %v1375_v47, %v3875_v42  ;;  %v1454_v28 = vmax.f32 %v1374_v46, %v3874_v43  ;;  %3608 = vmatprep.mubr.msk.bf16.mxu1 %vm1510_vm2, %v1474_v32 }
 0x1b9   : > { %v3883_v33 = vpop.permute.xlu1 %3882  ;;  %v3878_v37 = vpop.permute.xlu0 %3877 }
 0x1ba   : > { %v1475_v49 = vpack.c.bf16 %v1455_v45, %v1454_v28  ;;  %v3885_v50 = vunpack.i.h.bf16 %v3883_v33  ;;  %v3884_v48 = vunpack.i.l.bf16 %v3883_v33  ;;  %v3880_v44 = vunpack.i.h.bf16 %v3878_v37 }
 0x1bb   : > { %v3879_v52 = vunpack.i.l.bf16 %v3878_v37 }
 0x1bc   : > { %v1457_v53 = vmax.f32 %v1377_v63, %v3880_v44  ;;  %3609 = vmatmul.mubr.msk.bf16.gmra.mrb[52].mxu1 %vm1510_vm2, %v1475_v49  ;;  %v1459_v55 = vmax.f32 %v1379_v61, %v3885_v50  ;;  %v1458_v41 = vmax.f32 %v1378_v56, %v3884_v48  ;;  %v844_v61 = vld [vmem:[%s5337_s4 + $0x100] sm:$0x11] }
 0x1bd   : > { %v1456_v38 = vmax.f32 %v1376_v59, %v3879_v52  ;;  %v845_v6 = vunpack.c.l.bf16 %v844_v61  ;;  %v846_v11 = vunpack.c.h.bf16 %v844_v61 }
 0x1be   : > { %v1477_v57 = vpack.c.bf16 %v1459_v55, %v1458_v41 }
 0x1bf   : > { %v1476_v46 = vpack.c.bf16 %v1457_v53, %v1456_v38  ;;  %v4715_v14 = vrot.slane %v845_v6, %v4529_v3  ;;  %v4718_v15 = vrot.slane %v846_v11, %v4529_v3 }
 0x1c0   : > { %v3893_v47 = vpop.permute.xlu1 %3892 }
 0x1c1   : > { %3612 = vmatprep.mubr.msk.bf16.mxu1 %vm1510_vm2, %v1476_v46  ;;  %v3888_v58 = vpop.permute.xlu0 %3887  ;;  %v3895_v60 = vunpack.i.h.bf16 %v3893_v47  ;;  %v3894_v0 = vunpack.i.l.bf16 %v3893_v47 }
 0x1c2   : > { %v3890_v1 = vunpack.i.h.bf16 %v3888_v58  ;;  %v3889_v4 = vunpack.i.l.bf16 %v3888_v58 }
 0x1c3   : > { %v1463_v54 = vmax.f32 %v1383_v18, %v3895_v60  ;;  %v1462_v56 = vmax.f32 %v1382_v13, %v3894_v0 }
 0x1c4   : > { %v1461_v63 = vmax.f32 %v1381_v19, %v3890_v1  ;;  %v1460_v51 = vmax.f32 %v1380_v16, %v3889_v4  ;;  %3613 = vmatmul.mubr.msk.bf16.gmra.mrb[56].mxu1 %vm1510_vm2, %v1477_v57 }
 0x1c5   : > { %v1479_v12 = vpack.c.bf16 %v1463_v54, %v1462_v56 }
 0x1c6   : > { %v1478_v59 = vpack.c.bf16 %v1461_v63, %v1460_v51 }
 0x1c8   : > { %3616 = vmatprep.mubr.msk.bf16.mxu1 %vm1510_vm2, %v1478_v59 }
 0x1cc   : > { %3617 = vmatmul.mubr.msk.bf16.gmra.mrb[60].mxu1 %vm1510_vm2, %v1479_v12 }
 0x1cd   : > { %v1049_v16 = vpop.f32.mrb[32].mxu0 }
 0x1ce   : > { %v1050_v17 = vadd.f32 %v1049_v16, %v4715_v14  ;;  %v1051_v18 = vpop.f32.mrb[33].mxu0 }
 0x1cf   : > { %v1052_v5 = vadd.f32 %v1051_v18, %v4718_v15  ;;  %v1053_v13 = vpop.f32.mrb[34].mxu0 }
 0x1d0   : > { %v1128_v19 = vmax.f32 %v1050_v17, 0.0  ;;  %v1054_v20 = vadd.f32 %v1053_v13, %v4715_v14  ;;  %v1055_v8 = vpop.f32.mrb[35].mxu0 }
 0x1d1   : > { %v1129_v21 = vmax.f32 %v1052_v5, 0.0  ;;  %v1056_v22 = vadd.f32 %v1055_v8, %v4718_v15 }
 0x1d2   : > { %v1130_v23 = vmax.f32 %v1054_v20, 0.0 }
 0x1d3   : > { %v1160_v24 = vmax.f32 %v1128_v19, %v1129_v21  ;;  %v1131_v9 = vmax.f32 %v1056_v22, 0.0 }
 0x1d5   : > { %v1161_v10 = vmax.f32 %v1130_v23, %v1131_v9  ;;  %v1059_v25 = vpop.f32.mrb[36].mxu0 }
 0x1d6   : > { %v1060_v7 = vadd.f32 %v1059_v25, %v4715_v14  ;;  %v1061_v26 = vpop.f32.mrb[37].mxu0 }
 0x1d7   : > { %v1062_v27 = vadd.f32 %v1061_v26, %v4718_v15  ;;  %v1063_v29 = vpop.f32.mrb[38].mxu0  ;;  %v4727_v30 = vpack.c.bf16 %v1161_v10, %v1160_v24 }
 0x1d8   : > { %v1132_v34 = vmax.f32 %v1060_v7, 0.0  ;;  %v1064_v35 = vadd.f32 %v1063_v29, %v4715_v14  ;;  %v1065_v36 = vpop.f32.mrb[39].mxu0 }
 0x1d9   : > { %v1133_v39 = vmax.f32 %v1062_v27, 0.0  ;;  %v1066_v40 = vadd.f32 %v1065_v36, %v4718_v15 }
 0x1da   : > { %v1134_v31 = vmax.f32 %v1064_v35, 0.0 }
 0x1db   : > { %v1162_v32 = vmax.f32 %v1132_v34, %v1133_v39  ;;  %v1135_v42 = vmax.f32 %v1066_v40, 0.0 }
 0x1dd   : > { %v1163_v43 = vmax.f32 %v1134_v31, %v1135_v42  ;;  %v1069_v45 = vpop.f32.mrb[40].mxu0 }
 0x1de   : > { %v1070_v28 = vadd.f32 %v1069_v45, %v4715_v14  ;;  %v1071_v33 = vpop.f32.mrb[41].mxu0 }
 0x1df   : > { %v4732_v37 = vpack.c.bf16 %v1163_v43, %v1162_v32  ;;  %v1072_v49 = vadd.f32 %v1071_v33, %v4718_v15  ;;  %v1073_v50 = vpop.f32.mrb[42].mxu0 }
 0x1e0   : > { %v1136_v48 = vmax.f32 %v1070_v28, 0.0  ;;  %v1074_v44 = vadd.f32 %v1073_v50, %v4715_v14  ;;  %v1075_v52 = vpop.f32.mrb[43].mxu0 }
 0x1e1   : > { %v1137_v53 = vmax.f32 %v1072_v49, 0.0  ;;  %v1076_v55 = vadd.f32 %v1075_v52, %v4718_v15 }
 0x1e2   : > { %v1138_v41 = vmax.f32 %v1074_v44, 0.0 }
 0x1e3   : > { %v1164_v38 = vmax.f32 %v1136_v48, %v1137_v53  ;;  %v1139_v46 = vmax.f32 %v1076_v55, 0.0 }
 0x1e5   : > { %v1165_v47 = vmax.f32 %v1138_v41, %v1139_v46  ;;  %v1079_v57 = vpop.f32.mrb[44].mxu0 }
 0x1e6   : > { %v1080_v58 = vadd.f32 %v1079_v57, %v4715_v14  ;;  %v1081_v60 = vpop.f32.mrb[45].mxu0 }
 0x1e7   : > { %v1082_v0 = vadd.f32 %v1081_v60, %v4718_v15  ;;  %v1083_v1 = vpop.f32.mrb[46].mxu0  ;;  %v4739_v4 = vpack.c.bf16 %v1165_v47, %v1164_v38 }
 0x1e8   : > { %v1140_v61 = vmax.f32 %v1080_v58, 0.0  ;;  %v1084_v63 = vadd.f32 %v1083_v1, %v4715_v14  ;;  %v1085_v51 = vpop.f32.mrb[47].mxu0 }
 0x1e9   : > { %v1141_v54 = vmax.f32 %v1082_v0, 0.0  ;;  %v1086_v56 = vadd.f32 %v1085_v51, %v4718_v15 }
 0x1ea   : > { %v1142_v59 = vmax.f32 %v1084_v63, 0.0 }
 0x1eb   : > { %v1166_v6 = vmax.f32 %v1140_v61, %v1141_v54  ;;  %v1143_v11 = vmax.f32 %v1086_v56, 0.0 }
 0x1ed   : > { %v1167_v12 = vmax.f32 %v1142_v59, %v1143_v11  ;;  %v1089_v16 = vpop.f32.mrb[48].mxu0 }
 0x1ee   : > { %v1090_v17 = vadd.f32 %v1089_v16, %v4715_v14  ;;  %v1091_v18 = vpop.f32.mrb[49].mxu0 }
 0x1ef   : > { %v1092_v5 = vadd.f32 %v1091_v18, %v4718_v15  ;;  %v1093_v13 = vpop.f32.mrb[50].mxu0  ;;  %v4745_v19 = vpack.c.bf16 %v1167_v12, %v1166_v6 }
 0x1f0   : > { %v1144_v20 = vmax.f32 %v1090_v17, 0.0  ;;  %v1094_v8 = vadd.f32 %v1093_v13, %v4715_v14  ;;  %v1095_v21 = vpop.f32.mrb[51].mxu0 }
 0x1f1   : > { %v1145_v22 = vmax.f32 %v1092_v5, 0.0  ;;  %v1096_v23 = vadd.f32 %v1095_v21, %v4718_v15  ;;  %v4115_v21 = vld [vmem:[%s5339_s6 + $0xdc] ss:$12 sps:$4 sm:$0xff]  }
 0x1f2   : > { %v1146_v24 = vmax.f32 %v1094_v8, 0.0  ;;  %v4110_v8 = vld [vmem:[%s5339_s6 + $0xc0] ss:$12 sps:$4 sm:$0xff]  }
 0x1f3   : > { %v1168_v9 = vmax.f32 %v1144_v20, %v1145_v22  ;;  %v1147_v10 = vmax.f32 %v1096_v23, 0.0  ;;  %v4223_v20 = vmov 1   ;;  %v1480_v22 = vld [vmem:[%s5338_s5 + $0x30] sm:$0x1] }
 0x1f4   : > { %3942 = vset.pattern.permute.xlu1 %v4223_v20  ;;  %v1481_v23 = vunpack.c.l.bf16 %v1480_v22 }
 0x1f5   : > { %v1169_v25 = vmax.f32 %v1146_v24, %v1147_v10  ;;  %v1099_v7 = vpop.f32.mrb[52].mxu0  ;;  %v4116_v24 = vld [vmem:[%s5339_s6 + $0xc8] ss:$12 sps:$4 sm:$0xff]   ;;  %v4117_v10 = vld [vmem:[%s5339_s6 + $0xe0] ss:$12 sps:$4 sm:$0xff]  }
 0x1f6   : > { %v1100_v26 = vadd.f32 %v1099_v7, %v4715_v14  ;;  %v1101_v27 = vpop.f32.mrb[53].mxu0  ;;  %3620 = vmatprep.subr.bf16.mxu1 %v4116_v24 }
 0x1f7   : > { %v1102_v29 = vadd.f32 %v1101_v27, %v4718_v15  ;;  %v1103_v34 = vpop.f32.mrb[54].mxu0  ;;  %v4751_v35 = vpack.c.bf16 %v1169_v25, %v1168_v9  ;;  %v4789_v9 = vrot.slane %v1481_v23, %v4529_v3  ;;  %3621 = vmatpush3.bf16.msra.mxu1 %v4116_v24  ;;  %v3475_v24 = vld [vmem:[%s4879_s29] sm:$0xff]  }
 0x1f8   : > { %v1148_v36 = vmax.f32 %v1100_v26, 0.0  ;;  %v1104_v39 = vadd.f32 %v1103_v34, %v4715_v14  ;;  %v1105_v40 = vpop.f32.mrb[55].mxu0  ;;  %3622 = vmatprep.subr.bf16.mxu1 %v4117_v10 }
 0x1f9   : > { %v1149_v31 = vmax.f32 %v1102_v29, 0.0  ;;  %v1106_v32 = vadd.f32 %v1105_v40, %v4718_v15 }
 0x1fa   : > { %v1150_v42 = vmax.f32 %v1104_v39, 0.0  ;;  %v4806_v39 = vld [vmem:[%s5339_s6 + $0x8] ss:$12 sps:$4 sm:$0xff]  }
 0x1fb   : > { %v1170_v43 = vmax.f32 %v1148_v36, %v1149_v31  ;;  %v1151_v45 = vmax.f32 %v1106_v32, 0.0  ;;  %3623 = vmatpush3.bf16.msra.mxu1 %v4117_v10 }
 0x1fc   : > { %3640 = vmatprep.subr.bf16.mxu1 %v4806_v39 }
 0x1fd   : > { %v1171_v28 = vmax.f32 %v1150_v42, %v1151_v45  ;;  %v1109_v33 = vpop.f32.mrb[56].mxu0 }
 0x1fe   : > { %v1110_v49 = vadd.f32 %v1109_v33, %v4715_v14  ;;  %v1111_v50 = vpop.f32.mrb[57].mxu0 }
 0x1ff   : > { %v1112_v48 = vadd.f32 %v1111_v50, %v4718_v15  ;;  %v1113_v44 = vpop.f32.mrb[58].mxu0  ;;  %v4757_v52 = vpack.c.bf16 %v1171_v28, %v1170_v43 }
 0x200   : > { %v1152_v53 = vmax.f32 %v1110_v49, 0.0  ;;  %v1114_v55 = vadd.f32 %v1113_v44, %v4715_v14  ;;  %v1115_v41 = vpop.f32.mrb[59].mxu0  ;;  %v4120_v49 = vld [vmem:[%s5339_s6 + $0x4] ss:$12 sps:$4 sm:$0xff]  }
 0x201   : > { %v1153_v38 = vmax.f32 %v1112_v48, 0.0  ;;  %v1116_v46 = vadd.f32 %v1115_v41, %v4718_v15 }
 0x202   : > { %v1154_v47 = vmax.f32 %v1114_v55, 0.0 }
 0x203   : > { %v1172_v57 = vmax.f32 %v1152_v53, %v1153_v38  ;;  %v1155_v58 = vmax.f32 %v1116_v46, 0.0 }
 0x205   : > { %v1173_v60 = vmax.f32 %v1154_v47, %v1155_v58  ;;  %v1119_v0 = vpop.f32.mrb[60].mxu0 }
 0x206   : > { %v1120_v1 = vadd.f32 %v1119_v0, %v4715_v14  ;;  %v1121_v61 = vpop.f32.mrb[61].mxu0 }
 0x207   : > { %v1122_v63 = vadd.f32 %v1121_v61, %v4718_v15  ;;  %v1123_v51 = vpop.f32.mrb[62].mxu0  ;;  %v4763_v54 = vpack.c.bf16 %v1173_v60, %v1172_v57 }
 0x208   : > { %v1156_v56 = vmax.f32 %v1120_v1, 0.0  ;;  %v1124_v59 = vadd.f32 %v1123_v51, %v4715_v14  ;;  %v1125_v6 = vpop.f32.mrb[63].mxu0  ;;  %v4112_v14 = vld [vmem:[%s5339_s6 + $0xc4] ss:$12 sps:$4 sm:$0xff]  }
 0x209   : > { %v1157_v11 = vmax.f32 %v1122_v63, 0.0  ;;  %v1126_v12 = vadd.f32 %v1125_v6, %v4718_v15  ;;  %2112 = vmatprep.subr.bf16.mxu0 %v4112_v14  ;;  %v4113_v15 = vld [vmem:[%s5339_s6 + $0xd8] ss:$12 sps:$4 sm:$0xff]  }
 0x20a   : > { %v1158_v16 = vmax.f32 %v1124_v59, 0.0  ;;  %2113 = vmatpush1.bf16.msra.mxu0 %v4110_v8 }
 0x20b   : > { %v1174_v17 = vmax.f32 %v1156_v56, %v1157_v11  ;;  %v1159_v18 = vmax.f32 %v1126_v12, 0.0  ;;  %2114 = vmatprep.subr.bf16.mxu0 %v4115_v21 }
 0x20d   : > { %v1175_v5 = vmax.f32 %v1158_v16, %v1159_v18 }
 0x20e   : > { %2115 = vmatpush1.bf16.msra.mxu0 %v4113_v15 }
 0x20f   : > { %v4767_v13 = vpack.c.bf16 %v1175_v5, %v1174_v17  ;;  %2450 = vmatprep.subr.bf16.mxu0 %v4120_v49 }
 0x287   : > { %v3606_v25 = vpop.f32.mrb[48].mxu1 }
 0x288   : > { %v4795_v7 = vadd.f32 %v3606_v25, %v4789_v9  ;;  %v1569_v26 = vpop.f32.mrb[49].mxu1 }
 0x289   : > { %v4798_v27 = vadd.f32 %v1569_v26, %v4789_v9  ;;  %v3607_v29 = vpop.f32.mrb[50].mxu1 }
 0x28a   : > { %v4801_v34 = vadd.f32 %v3607_v29, %v4789_v9  ;;  %v1572_v36 = vpop.f32.mrb[51].mxu1  ;;  %v1634_v31 = vmax.f32 %v4795_v7, 0.0  ;;  %v4125_v7 = vld [vmem:[%s5339_s6 + $0x1c] ss:$12 sps:$4 sm:$0xff]  }
 0x28b   : > { %v4809_v40 = vadd.f32 %v1572_v36, %v4789_v9  ;;  %v1632_v42 = vmax.f32 %v4798_v27, 0.0 }
 0x28c   : > { %v1635_v32 = vmax.f32 %v4801_v34, 0.0  ;;  %v4122_v34 = vld [vmem:[%s5339_s6 + $0x20] ss:$12 sps:$4 sm:$0xff]  }
 0x28d   : > { %v1633_v43 = vmax.f32 %v4809_v40, 0.0 }
 0x28e   : > { %v3901_v45 = vpack.i.bf16 %v1635_v32, %v1634_v31 }
 0x28f   : > { %v3896_v28 = vpack.i.bf16 %v1633_v43, %v1632_v42  ;;  %v3610_v33 = vpop.f32.mrb[52].mxu1 }
 0x290   : > { %v4828_v50 = vadd.f32 %v3610_v33, %v4789_v9  ;;  %3902 = vrot.lane.b32.xlu1 %v3901_v45, %s4224_s22  ;;  %v1585_v48 = vpop.f32.mrb[53].mxu1  ;;  %v3476_v45 = vunpack.c.l.bf16 %v3475_v24 }
 0x291   : > { %v4832_v44 = vadd.f32 %v1585_v48, %v4789_v9  ;;  %v3611_v53 = vpop.f32.mrb[54].mxu1  ;;  %3897 = vrot.lane.b32.xlu0 %v3896_v28, %s4224_s22  ;;  %v3477_v28 = vunpack.c.h.bf16 %v3475_v24 }
 0x292   : > { %v4836_v55 = vadd.f32 %v3611_v53, %v4789_v9  ;;  %v1588_v41 = vpop.f32.mrb[55].mxu1  ;;  %v1638_v46 = vmax.f32 %v4828_v50, 0.0  ;;  %v3506_v53 = vld [vmem:[%s4879_s29 + $0x8] sm:$0xff]   ;;  %v4128_v50 = vld [vmem:[%s5339_s6 + $0x30] ss:$12 sps:$4 sm:$0xff]  }
 0x293   : > { %v4839_v38 = vadd.f32 %v1588_v41, %v4789_v9  ;;  %v1636_v57 = vmax.f32 %v4832_v44, 0.0  ;;  %v3943_v41 = vpack.i.bf16 %v3477_v28, %v3476_v45  ;;  %v4135_v44 = vld [vmem:[%s5339_s6 + $0x4c] ss:$12 sps:$4 sm:$0xff]  }
 0x294   : > { %v1639_v47 = vmax.f32 %v4836_v55, 0.0 }
 0x295   : > { %v1637_v58 = vmax.f32 %v4839_v38, 0.0 }
 0x296   : > { %v3911_v60 = vpack.i.bf16 %v1639_v47, %v1638_v46 }
 0x297   : > { %v3906_v0 = vpack.i.bf16 %v1637_v58, %v1636_v57  ;;  %v3614_v1 = vpop.f32.mrb[56].mxu1 }
 0x298   : > { %v4854_v61 = vadd.f32 %v3614_v1, %v4789_v9  ;;  %3912 = vrot.lane.b32.xlu1 %v3911_v60, %s4224_s22  ;;  %v1601_v63 = vpop.f32.mrb[57].mxu1  ;;  %v3480_v60 = vunpack.c.l.bf16 %v3506_v53  ;;  %v3507_v1 = vld [vmem:[%s4879_s29 + $0x10] sm:$0xff]  }
 0x299   : > { %v4858_v51 = vadd.f32 %v1601_v63, %v4789_v9  ;;  %v3615_v56 = vpop.f32.mrb[58].mxu1  ;;  %3907 = vrot.lane.b32.xlu0 %v3906_v0, %s4224_s22  ;;  %v3481_v0 = vunpack.c.h.bf16 %v3506_v53 }
 0x29a   : > { %v4862_v59 = vadd.f32 %v3615_v56, %v4789_v9  ;;  %v1604_v6 = vpop.f32.mrb[59].mxu1  ;;  %v1642_v12 = vmax.f32 %v4854_v61, 0.0  ;;  %v3484_v56 = vunpack.c.l.bf16 %v3507_v1  ;;  %v4138_v61 = vld [vmem:[%s5339_s6 + $0x60] ss:$12 sps:$4 sm:$0xff]  }
 0x29b   : > { %v4865_v11 = vadd.f32 %v1604_v6, %v4789_v9  ;;  %v1640_v17 = vmax.f32 %v4858_v51, 0.0  ;;  %v3949_v63 = vpack.i.bf16 %v3481_v0, %v3480_v60  ;;  %v3485_v6 = vunpack.c.h.bf16 %v3507_v1  ;;  %v3512_v0 = vld [vmem:[%s4879_s29 + $0x38] sm:$0xff]  }
 0x29c   : > { %v1643_v16 = vmax.f32 %v4862_v59, 0.0  ;;  %v4143_v51 = vld [vmem:[%s5339_s6 + $0x7c] ss:$12 sps:$4 sm:$0xff]  }
 0x29d   : > { %v1641_v18 = vmax.f32 %v4865_v11, 0.0 }
 0x29e   : > { %v3921_v5 = vpack.i.bf16 %v1643_v16, %v1642_v12 }
 0x29f   : > { %v3916_v8 = vpack.i.bf16 %v1641_v18, %v1640_v17  ;;  %v3618_v14 = vpop.f32.mrb[60].mxu1 }
 0x2a0   : > { %v4886_v15 = vadd.f32 %v3618_v14, %v4789_v9  ;;  %3922 = vrot.lane.b32.xlu1 %v3921_v5, %s4224_s22  ;;  %v1617_v21 = vpop.f32.mrb[61].mxu1  ;;  %v3508_v5 = vld [vmem:[%s4879_s29 + $0x18] sm:$0xff]  }
 0x2a1   : > { %v4890_v22 = vadd.f32 %v1617_v21, %v4789_v9  ;;  %v3619_v23 = vpop.f32.mrb[62].mxu1  ;;  %3917 = vrot.lane.b32.xlu0 %v3916_v8, %s4224_s22  ;;  %v3960_v8 = vpack.i.bf16 %v3485_v6, %v3484_v56  ;;  %v3488_v14 = vunpack.c.l.bf16 %v3508_v5  ;;  %v3489_v21 = vunpack.c.h.bf16 %v3508_v5 }
 0x2a2   : > { %v4895_v10 = vadd.f32 %v3619_v23, %v4789_v9  ;;  %v1620_v25 = vpop.f32.mrb[63].mxu1  ;;  %v1646_v29 = vmax.f32 %v4886_v15, 0.0  ;;  %v3509_v23 = vld [vmem:[%s4879_s29 + $0x20] sm:$0xff]   ;;  %v3504_v56 = vunpack.c.l.bf16 %v3512_v0  ;;  %v3505_v6 = vunpack.c.h.bf16 %v3512_v0 }
 0x2a3   : > { %v4898_v26 = vadd.f32 %v1620_v25, %v4789_v9  ;;  %v1644_v33 = vmax.f32 %v4890_v22, 0.0  ;;  %v3972_v24 = vpack.i.bf16 %v3489_v21, %v3488_v14  ;;  %v3492_v25 = vunpack.c.l.bf16 %v3509_v23  ;;  %v3109_v14 = vld [vmem:[%s5338_s5 + $0x48] sm:$0x1]  ;;  %v4149_v22 = vld [vmem:[%s5339_s6 + $0xac] ss:$12 sps:$4 sm:$0xff]  }
 0x2a4   : > { %v1647_v36 = vmax.f32 %v4895_v10, 0.0  ;;  %v3493_v45 = vunpack.c.h.bf16 %v3509_v23  ;;  %v4023_v5 = vpack.i.bf16 %v3505_v6, %v3504_v56  ;;  %v3110_v21 = vunpack.c.l.bf16 %v3109_v14  ;;  %v4130_v56 = vld [vmem:[%s5339_s6 + $0x34] ss:$12 sps:$4 sm:$0xff]  }
 0x2a5   : > { %v1645_v49 = vmax.f32 %v4898_v26, 0.0  ;;  %v1762_v26 = vld [vmem:[%s5338_s5 + $0x38] sm:$0x1] }
 0x2a6   : > { %v3931_v48 = vpack.i.bf16 %v1647_v36, %v1646_v29  ;;  %v3989_v28 = vpack.i.bf16 %v3493_v45, %v3492_v25 }
 0x2a7   : > { %v3926_v9 = vpack.i.bf16 %v1645_v49, %v1644_v33 }
 0x2a8   : > { %3932 = vrot.lane.b32.xlu1 %v3931_v48, %s4224_s22  ;;  %v3511_v48 = vld [vmem:[%s4879_s29 + $0x30] sm:$0xff]  }
 0x2a9   : > { %3927 = vrot.lane.b32.xlu0 %v3926_v9, %s4224_s22  ;;  %v3500_v53 = vunpack.c.l.bf16 %v3511_v48  ;;  %v3501_v9 = vunpack.c.h.bf16 %v3511_v48  ;;  %s3221_s22 = sshll.u32 %s303_s14, 4  ;;  %s5293_s22 = int_to_ptr.vmem [resolvable:$true] %s3221_s22 }
 0x2aa   : > { %s4157_s19 = scalar_lea.vmem %s5293_s22, 16  ;;  %p4164_p0 = scmp.lt.s32.totalorder %s5293_s22, %s4162_s21 }
 0x2ab   : > { %v4006_v60 = vpack.i.bf16 %v3501_v9, %v3500_v53  ;;  %p4158_p11 = scmp.ne.s32.totalorder %s5293_s22, %s4157_s19  ;;  %p4165_p1 = scmp.lt.s32.totalorder %s4163_s23, %s4157_s19 }
 0x2ac   : > { %3944 = vperm.xlu1 %3942, %v3943_v41  }
 0x2ad   : > { %3938 = vperm.xlu0 %3936, %v3943_v41   ;;  %v3510_v41 = vld [vmem:[%s4879_s29 + $0x28] sm:$0xff]   ;;  %s5291_s29 = scalar_lea.hbm %s5340_s7, %s4316_s15  ;;  %p4159_p12 = pnand %p4158_p11, %p4303_p5 }
 0x2ae   : > { %v3496_v1 = vunpack.c.l.bf16 %v3510_v41  ;;  %p4166_p2 = por %p4165_p1, %p4164_p0 }
 0x2af   : > { %p4160_p13 = pneg %p4159_p12 }
 0x2b0   : > { %3948 = vset.pattern.permute.xlu1 %v4221_v2 }
 0x2b1   : > { %3950 = vperm.xlu1 %3948, %v3949_v63   ;;  %3954 = vset.pattern.permute.xlu0 %v4223_v20  ;;  %p4167_p3 = pnand %p4166_p2, %p4160_p13 }
 0x2b2   : > { %3956 = vperm.xlu0 %3954, %v3949_v63   ;;  %v3497_v63 = vunpack.c.h.bf16 %v3510_v41 }
 0x2b5   : > { %3961 = vperm.xlu1 %3948, %v3960_v8  }
 0x2b6   : > { %3971 = vset.pattern.permute.xlu0 %v4221_v2 }
 0x2b7   : > { %3973 = vperm.xlu0 %3971, %v3972_v24  }
 0x2b9   : > { %3965 = vset.pattern.permute.xlu1 %v4223_v20 }
 0x2ba   : > { %3967 = vperm.xlu1 %3965, %v3960_v8   ;;  %v3994_v8 = vpack.i.bf16 %v3497_v63, %v3496_v1 }
 0x2bb   : > { %3988 = vset.pattern.permute.xlu0 %v4223_v20 }
 0x2bc   : > { %3990 = vperm.xlu0 %3988, %v3989_v28  }
 0x2be   : > { %3978 = vperm.xlu1 %3965, %v3972_v24  }
 0x2c0   : > { %4005 = vset.pattern.permute.xlu0 %v4221_v2 }
 0x2c1   : > { %4007 = vperm.xlu0 %4005, %v4006_v60  }
 0x2c2   : > { %3982 = vset.pattern.permute.xlu1 %v4221_v2 }
 0x2c3   : > { %3984 = vperm.xlu1 %3982, %v3989_v28  }
 0x2c5   : > { %4022 = vset.pattern.permute.xlu0 %v4223_v20 }
 0x2c6   : > { %4024 = vperm.xlu0 %4022, %v4023_v5  }
 0x2c7   : > { %3995 = vperm.xlu1 %3982, %v3994_v8  }
 0x2ca   : > { %4028 = vset.pattern.permute.xlu0 %v4221_v2 }
 0x2cb   : > { %3999 = vset.pattern.permute.xlu1 %v4223_v20 }
 0x2cc   : > { %4001 = vperm.xlu1 %3999, %v3994_v8   ;;  %v4126_v8 = vld [vmem:[%s5339_s6 + $0x38] ss:$12 sps:$4 sm:$0xff]  }
 0x2d0   : > { %4012 = vperm.xlu1 %3999, %v4006_v60   ;;  %v4118_v60 = vld [vmem:[%s5339_s6] ss:$12 sps:$4 sm:$0xff]  }
 0x2d4   : > { %4016 = vset.pattern.permute.xlu1 %v4221_v2 }
 0x2d5   : > { %4018 = vperm.xlu1 %4016, %v4023_v5  }
 0x2d9   : > { %3113 = vperm.xlu1 %4016, %v3110_v21  }
 0x302   : > { %v3903_v23 = vpop.permute.xlu1 %3902 }
 0x303   : > { %v3905_v24 = vunpack.i.h.bf16 %v3903_v23  ;;  %v3904_v25 = vunpack.i.l.bf16 %v3903_v23  ;;  %v3898_v45 = vpop.permute.xlu0 %3897 }
 0x304   : > { %v3900_v28 = vunpack.i.h.bf16 %v3898_v45  ;;  %v3899_v48 = vunpack.i.l.bf16 %v3898_v45 }
 0x305   : > { %v1715_v20 = vmax.f32 %v1635_v32, %v3905_v24  ;;  %v1714_v53 = vmax.f32 %v1634_v31, %v3904_v25  ;;  %v4133_v25 = vld [vmem:[%s5339_s6 + $0x48] ss:$12 sps:$4 sm:$0xff]  }
 0x306   : > { %v1713_v9 = vmax.f32 %v1633_v43, %v3900_v28  ;;  %v1712_v41 = vmax.f32 %v1632_v42, %v3899_v48  ;;  %v4123_v42 = vld [vmem:[%s5339_s6 + $0x18] ss:$12 sps:$4 sm:$0xff]   ;;  %v4131_v48 = vld [vmem:[%s5339_s6 + $0x68] ss:$12 sps:$4 sm:$0xff]  }
 0x307   : > { %v2049_v1 = vpack.c.bf16 %v1715_v20, %v1714_v53  ;;  %v4140_v20 = vld [vmem:[%s5339_s6 + $0x64] ss:$12 sps:$4 sm:$0xff]  }
 0x308   : > { %v2048_v0 = vpack.c.bf16 %v1713_v9, %v1712_v41  ;;  %v4132_v9 = vld [vmem:[%s5339_s6 + $0x80] ss:$12 sps:$4 sm:$0xff]  }
 0x30a   : > { %v3913_v31 = vpop.permute.xlu1 %3912  ;;  %3409 = vmatmul.mubr.msk.bf16.vlgmr.msra.gmra.mrb[64].mxu0 %vm449_vm0, %v2048_v0  ;;  %3624 = vmatprep.mubr.msk.bf16.mxu1 %vm449_vm0, %v2048_v0 }
 0x30b   : > { %v3915_v27 = vunpack.i.h.bf16 %v3913_v31  ;;  %v3914_v40 = vunpack.i.l.bf16 %v3913_v31  ;;  %v3908_v32 = vpop.permute.xlu0 %3907  ;;  %3625 = vmatmul.mubr.msk.bf16.vlgmr.msra.gmra.mrb[64].mxu1 %vm449_vm0, %v2049_v1  ;;  %2451 = vmatpush1.bf16.msra.mxu0 %v4118_v60  ;;  %v4136_v31 = vld [vmem:[%s5339_s6 + $0x98] ss:$12 sps:$4 sm:$0xff]  }
 0x30c   : > { %v3910_v43 = vunpack.i.h.bf16 %v3908_v32  ;;  %v3909_v63 = vunpack.i.l.bf16 %v3908_v32  ;;  %3641 = vmatpush3.bf16.msra.mxu1 %v4806_v39  ;;  %2154 = vmatprep.mubr.bf16.mxu0 %v4221_v2  ;;  %v4144_v32 = vld [vmem:[%s5339_s6 + $0x90] ss:$12 sps:$4 sm:$0xff]  }
 0x30d   : > { %v1719_v6 = vmax.f32 %v1639_v47, %v3915_v27  ;;  %v1718_v5 = vmax.f32 %v1638_v46, %v3914_v40  ;;  %3642 = vmatprep.subr.bf16.mxu1 %v4122_v34  ;;  %2452 = vmatprep.subr.bf16.mxu0 %v4125_v7  ;;  %v4127_v46 = vld [vmem:[%s5339_s6 + $0x50] ss:$12 sps:$4 sm:$0xff]   ;;  %v4146_v27 = vld [vmem:[%s5339_s6 + $0x94] ss:$12 sps:$4 sm:$0xff]  }
 0x30e   : > { %v1717_v39 = vmax.f32 %v1637_v58, %v3910_v43  ;;  %v1716_v14 = vmax.f32 %v1636_v57, %v3909_v63  ;;  %v1763_v43 = vunpack.c.l.bf16 %v1762_v26  ;;  %v1760_v63 = vld [vmem:[%s5338_s5 + $0x40] sm:$0x1] }
 0x30f   : > { %2453 = vmatpush1.bf16.msra.mxu0 %v4123_v42  ;;  %v4977_v55 = vpack.c.bf16 %v1719_v6, %v1718_v5  ;;  %v4153_v42 = vld [vmem:[%s5339_s6 + $0xf4] ss:$12 sps:$4 sm:$0xff]   ;;  %v1761_v6 = vunpack.c.l.bf16 %v1760_v63 }
 0x310   : > { %v2050_v21 = vpack.c.bf16 %v1717_v39, %v1716_v14  ;;  %3643 = vmatpush3.bf16.msra.mxu1 %v4122_v34  ;;  %2454 = vmatprep.subr.bf16.mxu0 %v4130_v56  ;;  %v1950_v56 = vsub.s32 1, %v4520_v62 }
 0x311   : > { %3644 = vmatprep.subr.bf16.mxu1 %v4126_v8 }
 0x312   : > { %v3923_v38 = vpop.permute.xlu1 %3922  ;;  %3410 = vmatmul.mubr.msk.bf16.gmra.mrb[68].mxu0 %vm449_vm0, %v2049_v1  ;;  %3628 = vmatprep.mubr.msk.bf16.mxu1 %vm449_vm0, %v2050_v21  ;;  %v4141_v1 = vld [vmem:[%s5339_s6 + $0x78] ss:$12 sps:$4 sm:$0xff]  }
 0x313   : > { %v3925_v47 = vunpack.i.h.bf16 %v3923_v38  ;;  %v3924_v57 = vunpack.i.l.bf16 %v3923_v38  ;;  %v3918_v58 = vpop.permute.xlu0 %3917  ;;  %3629 = vmatmul.mubr.msk.bf16.gmra.mrb[68].mxu1 %vm449_vm0, %v4977_v55  ;;  %2164 = vmatprep.mubr.bf16.mxu0 %v4221_v2 }
 0x314   : > { %v3920_v23 = vunpack.i.h.bf16 %v3918_v58  ;;  %v3919_v24 = vunpack.i.l.bf16 %v3918_v58  ;;  %3645 = vmatpush3.bf16.msra.mxu1 %v4126_v8  ;;  %2455 = vmatpush1.bf16.msra.mxu0 %v4128_v50  ;;  %v5081_v8 = vrot.slane %v1763_v43, %v4529_v3  ;;  %v5084_v50 = vrot.slane %v1763_v43, %v1950_v56 }
 0x315   : > { %v1723_v45 = vmax.f32 %v1643_v16, %v3925_v47  ;;  %v1722_v28 = vmax.f32 %v1642_v12, %v3924_v57  ;;  %3646 = vmatprep.subr.bf16.mxu1 %v4127_v46  ;;  %2456 = vmatprep.subr.bf16.mxu0 %v4135_v44 }
 0x316   : > { %v1721_v53 = vmax.f32 %v1641_v18, %v3920_v23  ;;  %v1720_v59 = vmax.f32 %v1640_v17, %v3919_v24 }
 0x317   : > { %v5010_v12 = vpack.c.bf16 %v1723_v45, %v1722_v28 }
 0x318   : > { %v2052_v16 = vpack.c.bf16 %v1721_v53, %v1720_v59  ;;  %3647 = vmatpush3.bf16.msra.mxu1 %v4127_v46  ;;  %2457 = vmatpush1.bf16.msra.mxu0 %v4133_v25  ;;  %v5087_v46 = vrot.slane %v1761_v6, %v4529_v3 }
 0x319   : > { %3648 = vmatprep.subr.bf16.mxu1 %v4131_v48  ;;  %2458 = vmatprep.subr.bf16.mxu0 %v4140_v20 }
 0x31a   : > { %v3933_v11 = vpop.permute.xlu1 %3932  ;;  %3411 = vmatmul.mubr.msk.bf16.gmra.mrb[72].mxu0 %vm449_vm0, %v2050_v21  ;;  %3632 = vmatprep.mubr.msk.bf16.mxu1 %vm449_vm0, %v2052_v16 }
 0x31b   : > { %v3935_v17 = vunpack.i.h.bf16 %v3933_v11  ;;  %v3934_v18 = vunpack.i.l.bf16 %v3933_v11  ;;  %v3928_v41 = vpop.permute.xlu0 %3927  ;;  %3633 = vmatmul.mubr.msk.bf16.gmra.mrb[72].mxu1 %vm449_vm0, %v5010_v12  ;;  %2174 = vmatprep.mubr.bf16.mxu0 %v4221_v2 }
 0x31c   : > { %v3930_v60 = vunpack.i.h.bf16 %v3928_v41  ;;  %v3929_v0 = vunpack.i.l.bf16 %v3928_v41  ;;  %3649 = vmatpush3.bf16.msra.mxu1 %v4131_v48  ;;  %2459 = vmatpush1.bf16.msra.mxu0 %v4138_v61 }
 0x31d   : > { %v1727_v34 = vmax.f32 %v1647_v36, %v3935_v17  ;;  %v1726_v7 = vmax.f32 %v1646_v29, %v3934_v18  ;;  %3650 = vmatprep.subr.bf16.mxu1 %v4132_v9  ;;  %2460 = vmatprep.subr.bf16.mxu0 %v4143_v51  ;;  %v4137_v29 = vld [vmem:[%s5339_s6 + $0xb0] ss:$12 sps:$4 sm:$0xff]  }
 0x31e   : > { %v1725_v40 = vmax.f32 %v1645_v49, %v3930_v60  ;;  %v1724_v10 = vmax.f32 %v1644_v33, %v3929_v0  ;;  %v4147_v33 = vld [vmem:[%s5339_s6 + $0xa8] ss:$12 sps:$4 sm:$0xff]   ;;  %v4150_v49 = vld [vmem:[%s5339_s6 + $0xf8] ss:$12 sps:$4 sm:$0xff]  }
 0x31f   : > { %v5042_v15 = vpack.c.bf16 %v1727_v34, %v1726_v7 }
 0x320   : > { %v5040_v36 = vpack.c.bf16 %v1725_v40, %v1724_v10  ;;  %3651 = vmatpush3.bf16.msra.mxu1 %v4132_v9  ;;  %2461 = vmatpush1.bf16.msra.mxu0 %v4141_v1 }
 0x321   : > { %3652 = vmatprep.subr.bf16.mxu1 %v4136_v31  ;;  %2462 = vmatprep.subr.bf16.mxu0 %v4146_v27 }
 0x322   : > { %3412 = vmatmul.mubr.msk.bf16.gmra.mrb[76].mxu0 %vm449_vm0, %v4977_v55  ;;  %3636 = vmatprep.mubr.msk.bf16.mxu1 %vm449_vm0, %v5040_v36 }
 0x323   : > { %3637 = vmatmul.mubr.msk.bf16.gmra.mrb[76].mxu1 %vm449_vm0, %v5042_v15  ;;  %2184 = vmatprep.mubr.bf16.mxu0 %v4221_v2 }
 0x324   : > { %3653 = vmatpush3.bf16.msra.mxu1 %v4136_v31  ;;  %3656 = vmatprep.mubr.bf16.mxu1 %v4727_v30 }
 0x325   : > { %3654 = vmatprep.subr.bf16.mxu1 %v4137_v29  ;;  %2463 = vmatpush1.bf16.msra.mxu0 %v4144_v32 }
 0x326   : > { %2464 = vmatprep.subr.bf16.mxu0 %v4149_v22 }
 0x328   : > { %3655 = vmatpush3.bf16.msra.mxu1 %v4137_v29 }
 0x329   : > { %2465 = vmatpush1.bf16.msra.mxu0 %v4147_v33  ;;  %3672 = vmatprep.subr.bf16.mxu1 %v4150_v49 }
 0x32a   : > { %3413 = vmatmul.mubr.msk.bf16.gmra.mrb[80].mxu0 %vm449_vm0, %v2052_v16  ;;  %2712 = vmatprep.subr.bf16.mxu0 %v4153_v42 }
 0x32b   : > { %3657 = vmatmul.mubr.bf16.vlgmr.msra.gmra.mrb[64].mxu1 %v4732_v37  ;;  %2194 = vmatprep.mubr.bf16.mxu0 %v4221_v2  ;;  %v3945_v5 = vpop.permute.xlu1 %3944 }
 0x32c   : > { %3660 = vmatprep.mubr.bf16.mxu1 %v4739_v4  ;;  %v3939_v39 = vpop.permute.xlu0 %3938  ;;  %3673 = vmatpush3.bf16.msra.mxu1 %v4150_v49  ;;  %v3947_v55 = vunpack.i.h.bf16 %v3945_v5  ;;  %v3946_v62 = vunpack.i.l.bf16 %v3945_v5 }
 0x32d   : > { %v3941_v14 = vunpack.i.h.bf16 %v3939_v39  ;;  %v3940_v21 = vunpack.i.l.bf16 %v3939_v39 }
 0x32e   : > { %v1953_v24 = vmul.f32 %v3947_v55, %v5084_v50  ;;  %v1952_v25 = vmul.f32 %v3946_v62, %v5084_v50 }
 0x32f   : > { %v1849_v44 = vmul.f32 %v3941_v14, %v5081_v8  ;;  %v1848_v38 = vmul.f32 %v3940_v21, %v5081_v8 }
 0x330   : > { %v3951_v47 = vpop.permute.xlu1 %3950 }
 0x331   : > { %v3953_v57 = vunpack.i.h.bf16 %v3951_v47  ;;  %v3952_v58 = vunpack.i.l.bf16 %v3951_v47  ;;  %v3957_v23 = vpop.permute.xlu0 %3956  ;;  %v1869_v45 = vadd.f32 %v5087_v46, %v1849_v44  ;;  %v1868_v28 = vadd.f32 %v5087_v46, %v1848_v38 }
 0x332   : > { %3414 = vmatmul.mubr.msk.bf16.gmra.mrb[84].mxu0 %vm449_vm0, %v5010_v12  ;;  %v3959_v53 = vunpack.i.h.bf16 %v3957_v23  ;;  %v3958_v59 = vunpack.i.l.bf16 %v3957_v23 }
 0x333   : > { %3661 = vmatmul.mubr.bf16.gmra.mrb[68].mxu1 %v4745_v19  ;;  %v1851_v48 = vmul.f32 %v3953_v57, %v5081_v8  ;;  %v1850_v20 = vmul.f32 %v3952_v58, %v5081_v8  ;;  %2204 = vmatprep.mubr.bf16.mxu0 %v4221_v2  ;;  %v1969_v12 = vadd.f32 %v1953_v24, %v1869_v45 }
 0x334   : > { %3664 = vmatprep.mubr.bf16.mxu1 %v4751_v35  ;;  %v3962_v16 = vpop.permute.xlu1 %3961  ;;  %v1968_v51 = vadd.f32 %v1952_v25, %v1868_v28  ;;  %v1955_v18 = vmul.f32 %v3959_v53, %v5084_v50  ;;  %v1954_v41 = vmul.f32 %v3958_v59, %v5084_v50 }
 0x335   : > { %v3964_v61 = vunpack.i.h.bf16 %v3962_v16  ;;  %v3963_v9 = vunpack.i.l.bf16 %v3962_v16  ;;  %v1871_v11 = vadd.f32 %v5087_v46, %v1851_v48  ;;  %v1870_v17 = vadd.f32 %v5087_v46, %v1850_v20 }
 0x336   : > { %v3974_v60 = vpop.permute.xlu0 %3973  ;;  %v1985_v10 = vmax.f32 %v1969_v12, 0.0  ;;  %v1984_v29 = vmax.f32 %v1968_v51, 0.0 }
 0x337   : > { %v1853_v0 = vmul.f32 %v3964_v61, %v5081_v8  ;;  %v1852_v1 = vmul.f32 %v3963_v9, %v5081_v8  ;;  %v3976_v27 = vunpack.i.h.bf16 %v3974_v60  ;;  %v3975_v40 = vunpack.i.l.bf16 %v3974_v60 }
 0x338   : > { %v1971_v32 = vadd.f32 %v1955_v18, %v1871_v11  ;;  %v1970_v22 = vadd.f32 %v1954_v41, %v1870_v17  ;;  %v5119_v39 = vpack.c.bf16 %v1985_v10, %v1984_v29 }
 0x339   : > { %v3968_v34 = vpop.permute.xlu1 %3967  ;;  %v1873_v26 = vadd.f32 %v5087_v46, %v1853_v0  ;;  %v1872_v33 = vadd.f32 %v5087_v46, %v1852_v1  ;;  %v1855_v6 = vmul.f32 %v3976_v27, %v5081_v8  ;;  %v1854_v5 = vmul.f32 %v3975_v40, %v5081_v8  ;;  %v4151_v1 = vld [vmem:[%s5339_s6 + $0xf0] ss:$12 sps:$4 sm:$0xff]  }
 0x33a   : > { %3415 = vmatmul.mubr.msk.bf16.gmra.mrb[88].mxu0 %vm449_vm0, %v5040_v36  ;;  %v3970_v7 = vunpack.i.h.bf16 %v3968_v34  ;;  %v3969_v31 = vunpack.i.l.bf16 %v3968_v34  ;;  %v1987_v55 = vmax.f32 %v1971_v32, 0.0  ;;  %v1986_v62 = vmax.f32 %v1970_v22, 0.0 }
 0x33b   : > { %3665 = vmatmul.mubr.bf16.gmra.mrb[72].mxu1 %v4757_v52  ;;  %2214 = vmatprep.mubr.bf16.mxu0 %v4221_v2  ;;  %v3991_v43 = vpop.permute.xlu0 %3990  ;;  %v1875_v23 = vadd.f32 %v5087_v46, %v1855_v6  ;;  %v1874_v24 = vadd.f32 %v5087_v46, %v1854_v5 }
 0x33c   : > { %3668 = vmatprep.mubr.bf16.mxu1 %v4763_v54  ;;  %v1957_v36 = vmul.f32 %v3970_v7, %v5084_v50  ;;  %v1956_v49 = vmul.f32 %v3969_v31, %v5084_v50  ;;  %v3993_v44 = vunpack.i.h.bf16 %v3991_v43  ;;  %v3992_v38 = vunpack.i.l.bf16 %v3991_v43 }
 0x33d   : > { %v3979_v42 = vpop.permute.xlu1 %3978  ;;  %v5129_v53 = vpack.c.bf16 %v1987_v55, %v1986_v62 }
 0x33e   : > { %v3981_v63 = vunpack.i.h.bf16 %v3979_v42  ;;  %v3980_v56 = vunpack.i.l.bf16 %v3979_v42  ;;  %v1972_v14 = vadd.f32 %v1956_v49, %v1872_v33  ;;  %v1973_v21 = vadd.f32 %v1957_v36, %v1873_v26 }
 0x33f   : > { %v1961_v16 = vmul.f32 %v3993_v44, %v5084_v50  ;;  %v1960_v61 = vmul.f32 %v3992_v38, %v5084_v50 }
 0x340   : > { %v1959_v47 = vmul.f32 %v3981_v63, %v5084_v50  ;;  %v1958_v57 = vmul.f32 %v3980_v56, %v5084_v50  ;;  %v4008_v28 = vpop.permute.xlu0 %4007  ;;  %v1988_v48 = vmax.f32 %v1972_v14, 0.0  ;;  %v1989_v20 = vmax.f32 %v1973_v21, 0.0 }
 0x341   : > { %v4010_v11 = vunpack.i.h.bf16 %v4008_v28  ;;  %v4009_v17 = vunpack.i.l.bf16 %v4008_v28 }
 0x342   : > { %3416 = vmatmul.mubr.msk.bf16.gmra.mrb[92].mxu0 %vm449_vm0, %v5042_v15  ;;  %v3985_v58 = vpop.permute.xlu1 %3984  ;;  %v1975_v9 = vadd.f32 %v1959_v47, %v1875_v23  ;;  %v1974_v12 = vadd.f32 %v1958_v57, %v1874_v24  ;;  %v5142_v34 = vpack.c.bf16 %v1989_v20, %v1988_v48 }
 0x343   : > { %3669 = vmatmul.mubr.bf16.gmra.mrb[76].mxu1 %v4767_v13  ;;  %v3987_v25 = vunpack.i.h.bf16 %v3985_v58  ;;  %v3986_v45 = vunpack.i.l.bf16 %v3985_v58  ;;  %2482 = vmatprep.mubr.bf16.mxu0 %v4221_v2  ;;  %v1861_v10 = vmul.f32 %v4010_v11, %v5081_v8  ;;  %v1860_v29 = vmul.f32 %v4009_v17, %v5081_v8 }
 0x344   : > { %3674 = vmatprep.mubr.msk.bf16.mxu1 %vm1246_vm1, %v5119_v39  ;;  %v1991_v32 = vmax.f32 %v1975_v9, 0.0  ;;  %v1990_v22 = vmax.f32 %v1974_v12, 0.0 }
 0x345   : > { %v1857_v15 = vmul.f32 %v3987_v25, %v5081_v8  ;;  %v1856_v59 = vmul.f32 %v3986_v45, %v5081_v8  ;;  %v1881_v14 = vadd.f32 %v5087_v46, %v1861_v10  ;;  %v1880_v21 = vadd.f32 %v5087_v46, %v1860_v29  ;;  %v4025_v55 = vpop.permute.xlu0 %4024 }
 0x346   : > { %v3996_v51 = vpop.permute.xlu1 %3995  ;;  %v2667_v5 = vpack.c.bf16 %v1991_v32, %v1990_v22  ;;  %v4027_v24 = vunpack.i.h.bf16 %v4025_v55  ;;  %v4026_v28 = vunpack.i.l.bf16 %v4025_v55 }
 0x347   : > { %v1877_v18 = vadd.f32 %v5087_v46, %v1857_v15  ;;  %v1876_v41 = vadd.f32 %v5087_v46, %v1856_v59  ;;  %v3998_v60 = vunpack.i.h.bf16 %v3996_v51  ;;  %v3997_v0 = vunpack.i.l.bf16 %v3996_v51 }
 0x348   : > { %v1967_v12 = vmul.f32 %v4027_v24, %v5084_v50  ;;  %v1966_v11 = vmul.f32 %v4026_v28, %v5084_v50 }
 0x349   : > { %v1859_v7 = vmul.f32 %v3998_v60, %v5081_v8  ;;  %v1858_v31 = vmul.f32 %v3997_v0, %v5081_v8  ;;  %v1977_v27 = vadd.f32 %v1961_v16, %v1877_v18  ;;  %v1976_v40 = vadd.f32 %v1960_v61, %v1876_v41 }
 0x34a   : > { %2483 = vmatmul.mubr.bf16.vlgmr.msra.gmra.mrb[64].mxu0 %v4727_v30 }
 0x34b   : > { %2713 = vmatpush1.bf16.msra.mxu0 %v4151_v1  ;;  %3675 = vmatmul.mubr.msk.bf16.vlgmr.msra.gmra.mrb[64].mxu1 %vm1246_vm1, %v5129_v53  ;;  %v4002_v26 = vpop.permute.xlu1 %4001  ;;  %v1993_v33 = vmax.f32 %v1977_v27, 0.0  ;;  %v1992_v36 = vmax.f32 %v1976_v40, 0.0  ;;  %v1879_v49 = vadd.f32 %v5087_v46, %v1859_v7  ;;  %v1878_v42 = vadd.f32 %v5087_v46, %v1858_v31 }
 0x34c   : > { %v4004_v43 = vunpack.i.h.bf16 %v4002_v26  ;;  %v4003_v63 = vunpack.i.l.bf16 %v4002_v26  ;;  %2492 = vmatprep.mubr.bf16.mxu0 %v4221_v2  ;;  %3678 = vmatprep.mubr.msk.bf16.mxu1 %vm1246_vm1, %v5142_v34 }
 0x34d   : > { %v2668_v62 = vpack.c.bf16 %v1993_v33, %v1992_v36 }
 0x34e   : > { %v1963_v30 = vmul.f32 %v4004_v43, %v5084_v50  ;;  %v1962_v56 = vmul.f32 %v4003_v63, %v5084_v50 }
 0x34f   : > { %v4013_v6 = vpop.permute.xlu1 %4012 }
 0x350   : > { %v1978_v44 = vadd.f32 %v1962_v56, %v1878_v42  ;;  %v1979_v38 = vadd.f32 %v1963_v30, %v1879_v49  ;;  %v4015_v47 = vunpack.i.h.bf16 %v4013_v6  ;;  %v4014_v57 = vunpack.i.l.bf16 %v4013_v6 }
 0x352   : > { %v1965_v58 = vmul.f32 %v4015_v47, %v5084_v50  ;;  %v1964_v23 = vmul.f32 %v4014_v57, %v5084_v50  ;;  %2493 = vmatmul.mubr.bf16.gmra.mrb[68].mxu0 %v4732_v37  ;;  %v1994_v25 = vmax.f32 %v1978_v44, 0.0  ;;  %v1995_v45 = vmax.f32 %v1979_v38, 0.0 }
 0x353   : > { %3679 = vmatmul.mubr.msk.bf16.gmra.mrb[68].mxu1 %vm1246_vm1, %v2667_v5  ;;  %2502 = vmatprep.mubr.bf16.mxu0 %v4221_v2 }
 0x354   : > { %v1981_v48 = vadd.f32 %v1965_v58, %v1881_v14  ;;  %v1980_v20 = vadd.f32 %v1964_v23, %v1880_v21  ;;  %v4019_v15 = vpop.permute.xlu1 %4018  ;;  %3682 = vmatprep.mubr.msk.bf16.mxu1 %vm1246_vm1, %v2668_v62  ;;  %v2669_v17 = vpack.c.bf16 %v1995_v45, %v1994_v25 }
 0x355   : > { %v4021_v59 = vunpack.i.h.bf16 %v4019_v15  ;;  %v4020_v16 = vunpack.i.l.bf16 %v4019_v15 }
 0x356   : > { %v1997_v61 = vmax.f32 %v1981_v48, 0.0  ;;  %v1996_v9 = vmax.f32 %v1980_v20, 0.0 }
 0x357   : > { %v1863_v37 = vmul.f32 %v4021_v59, %v5081_v8  ;;  %v1862_v51 = vmul.f32 %v4020_v16, %v5081_v8 }
 0x358   : > { %v2670_v18 = vpack.c.bf16 %v1997_v61, %v1996_v9 }
 0x359   : > { %v1883_v41 = vadd.f32 %v5087_v46, %v1863_v37  ;;  %v1882_v60 = vadd.f32 %v5087_v46, %v1862_v51 }
 0x35a   : > { %2503 = vmatmul.mubr.bf16.gmra.mrb[72].mxu0 %v4739_v4  ;;  %v2971_v4 = vld [vmem:[%s5339_s6 + $0x110] sm:$0x1] }
 0x35b   : > { %v1983_v0 = vadd.f32 %v1967_v12, %v1883_v41  ;;  %v1982_v1 = vadd.f32 %v1966_v11, %v1882_v60  ;;  %3683 = vmatmul.mubr.msk.bf16.gmra.mrb[72].mxu1 %vm1246_vm1, %v2669_v17  ;;  %2512 = vmatprep.mubr.bf16.mxu0 %v4221_v2 }
 0x35c   : > { %3686 = vmatprep.mubr.msk.bf16.mxu1 %vm1246_vm1, %v2670_v18 }
 0x35d   : > { %v1999_v7 = vmax.f32 %v1983_v0, 0.0  ;;  %v1998_v8 = vmax.f32 %v1982_v1, 0.0 }
 0x35f   : > { %v2671_v31 = vpack.c.bf16 %v1999_v7, %v1998_v8  ;;  %v2970_v8 = vld [vmem:[%s5339_s6 + $0x108] sm:$0x11] }
 0x362   : > { %2513 = vmatmul.mubr.bf16.gmra.mrb[76].mxu0 %v4745_v19  ;;  %v2974_v19 = vunpack.c.l.bf16 %v2971_v4  ;;  %v2973_v4 = vunpack.c.h.bf16 %v2970_v8 }
 0x363   : > { %3687 = vmatmul.mubr.msk.bf16.gmra.mrb[76].mxu1 %vm1246_vm1, %v2671_v31  ;;  %2522 = vmatprep.mubr.bf16.mxu0 %v4221_v2 }
 0x36a   : > { %2523 = vmatmul.mubr.bf16.gmra.mrb[80].mxu0 %v4751_v35  ;;  %v2986_v35 = vrot.slane %v2974_v19, %v4529_v3 }
 0x36b   : > { %2532 = vmatprep.mubr.bf16.mxu0 %v4221_v2 }
 0x372   : > { %2533 = vmatmul.mubr.bf16.gmra.mrb[84].mxu0 %v4757_v52 }
 0x373   : > { %2542 = vmatprep.mubr.bf16.mxu0 %v4221_v2 }
 0x37a   : > { %2543 = vmatmul.mubr.bf16.gmra.mrb[88].mxu0 %v4763_v54 }
 0x37b   : > { %2552 = vmatprep.mubr.bf16.mxu0 %v4221_v2 }
 0x382   : > { %2553 = vmatmul.mubr.bf16.gmra.mrb[92].mxu0 %v4767_v13 }
 0x383   : > { %2744 = vmatprep.mubr.bf16.mxu0 %v4221_v2 }
 0x38a   : > { %3452 = vmatmul.mubr.msk.bf16.vlgmr.msra.gmra.mrb[64].mxu0 %vm1246_vm1, %v5119_v39  ;;  %v5212_v39 = vld [vmem:[%s5339_s6 + $0x120] sm:$0x11] }
 0x38b   : > { %2754 = vmatprep.mubr.bf16.mxu0 %v4221_v2 }
 0x392   : > { %3453 = vmatmul.mubr.msk.bf16.gmra.mrb[68].mxu0 %vm1246_vm1, %v5129_v53 }
 0x393   : > { %2764 = vmatprep.mubr.bf16.mxu0 %v4221_v2 }
 0x39a   : > { %3454 = vmatmul.mubr.msk.bf16.gmra.mrb[72].mxu0 %vm1246_vm1, %v5142_v34  ;;  %v3469_v34 = vcombine.high %v5212_v39, %v5212_v39 }
 0x39b   : > { %2774 = vmatprep.mubr.bf16.mxu0 %v4221_v2 }
 0x39c   : > { %3159 = vmatprep.mubr.bf16.mxu1 %v3469_v34 }
 0x3a2   : > { %3455 = vmatmul.mubr.msk.bf16.gmra.mrb[76].mxu0 %vm1246_vm1, %v2667_v5 }
 0x3a3   : > { %2784 = vmatprep.mubr.bf16.mxu0 %v4221_v2 }
 0x3aa   : > { %3456 = vmatmul.mubr.msk.bf16.gmra.mrb[80].mxu0 %vm1246_vm1, %v2668_v62 }
 0x3ab   : > { %2794 = vmatprep.mubr.bf16.mxu0 %v4221_v2 }
 0x3b2   : > { %3457 = vmatmul.mubr.msk.bf16.gmra.mrb[84].mxu0 %vm1246_vm1, %v2669_v17 }
 0x3b3   : > { %2804 = vmatprep.mubr.bf16.mxu0 %v4221_v2 }
 0x3ba   : > { %3458 = vmatmul.mubr.msk.bf16.gmra.mrb[88].mxu0 %vm1246_vm1, %v2670_v18 }
 0x3bb   : > { %2814 = vmatprep.mubr.bf16.mxu0 %v4221_v2 }
 0x3c2   : > { %3459 = vmatmul.mubr.msk.bf16.gmra.mrb[92].mxu0 %vm1246_vm1, %v2671_v31  ;;  %v2972_v31 = vunpack.c.l.bf16 %v2970_v8 }
 0x3c4   : > { %v5236_v19 = vrot.slane %v2972_v31, %v4529_v3 }
 0x41e   : > { %v3676_v52 = vpop.f32.mrb[64].mxu1 }
 0x41f   : > { %v2995_v54 = vadd.f32 %v3676_v52, %v2986_v35  ;;  %v2859_v13 = vpop.f32.mrb[65].mxu1  ;;  %v5239_v52 = vrot.slane %v2973_v4, %v4529_v3 }
 0x420   : > { %v2989_v50 = vadd.f32 %v2986_v35, %v2859_v13  ;;  %v3677_v46 = vpop.f32.mrb[66].mxu1 }
 0x421   : > { %v2998_v2 = vadd.f32 %v3677_v46, %v2986_v35  ;;  %v2862_v53 = vpop.f32.mrb[67].mxu1  ;;  %v3043_v40 = vmax.f32 %v2995_v54, 0.0 }
 0x422   : > { %v2992_v27 = vadd.f32 %v2986_v35, %v2862_v53  ;;  %v3037_v29 = vmax.f32 %v2989_v50, 0.0 }
 0x423   : > { %v3046_v10 = vmax.f32 %v2998_v2, 0.0 }
 0x424   : > { %v3040_v32 = vmax.f32 %v2992_v27, 0.0 }
 0x425   : > { %v5216_v22 = vpack.c.bf16 %v3046_v10, %v3043_v40 }
 0x426   : > { %v5218_v26 = vpack.c.bf16 %v3040_v32, %v3037_v29  ;;  %v3680_v33 = vpop.f32.mrb[68].mxu1 }
 0x427   : > { %v3007_v36 = vadd.f32 %v3680_v33, %v2986_v35  ;;  %v2875_v49 = vpop.f32.mrb[69].mxu1 }
 0x428   : > { %v3001_v42 = vadd.f32 %v2986_v35, %v2875_v49  ;;  %v3681_v43 = vpop.f32.mrb[70].mxu1 }
 0x429   : > { %v3010_v63 = vadd.f32 %v3681_v43, %v2986_v35  ;;  %v2878_v30 = vpop.f32.mrb[71].mxu1  ;;  %v3055_v6 = vmax.f32 %v3007_v36, 0.0 }
 0x42a   : > { %v3004_v56 = vadd.f32 %v2986_v35, %v2878_v30  ;;  %v3049_v14 = vmax.f32 %v3001_v42, 0.0 }
 0x42b   : > { %v3058_v5 = vmax.f32 %v3010_v63, 0.0 }
 0x42c   : > { %v3052_v21 = vmax.f32 %v3004_v56, 0.0 }
 0x42d   : > { %v5220_v55 = vpack.c.bf16 %v3058_v5, %v3055_v6 }
 0x42e   : > { %v5222_v62 = vpack.c.bf16 %v3052_v21, %v3049_v14  ;;  %v3684_v44 = vpop.f32.mrb[72].mxu1 }
 0x42f   : > { %v3019_v38 = vadd.f32 %v3684_v44, %v2986_v35  ;;  %v2891_v47 = vpop.f32.mrb[73].mxu1 }
 0x430   : > { %v3013_v57 = vadd.f32 %v2986_v35, %v2891_v47  ;;  %v3685_v58 = vpop.f32.mrb[74].mxu1 }
 0x431   : > { %v3022_v23 = vadd.f32 %v3685_v58, %v2986_v35  ;;  %v2894_v24 = vpop.f32.mrb[75].mxu1  ;;  %v3067_v45 = vmax.f32 %v3019_v38, 0.0 }
 0x432   : > { %v3016_v25 = vadd.f32 %v2986_v35, %v2894_v24  ;;  %v3061_v48 = vmax.f32 %v3013_v57, 0.0 }
 0x433   : > { %v3070_v28 = vmax.f32 %v3022_v23, 0.0 }
 0x434   : > { %v3064_v20 = vmax.f32 %v3016_v25, 0.0 }
 0x435   : > { %v5224_v15 = vpack.c.bf16 %v3070_v28, %v3067_v45 }
 0x436   : > { %v5226_v59 = vpack.c.bf16 %v3064_v20, %v3061_v48  ;;  %v3688_v16 = vpop.f32.mrb[76].mxu1 }
 0x437   : > { %v3031_v61 = vadd.f32 %v3688_v16, %v2986_v35  ;;  %v2907_v9 = vpop.f32.mrb[77].mxu1 }
 0x438   : > { %v3025_v12 = vadd.f32 %v2986_v35, %v2907_v9  ;;  %v3689_v37 = vpop.f32.mrb[78].mxu1 }
 0x439   : > { %v3034_v51 = vadd.f32 %v3689_v37, %v2986_v35  ;;  %v2910_v11 = vpop.f32.mrb[79].mxu1  ;;  %v3079_v18 = vmax.f32 %v3031_v61, 0.0 }
 0x43a   : > { %v3028_v17 = vadd.f32 %v2986_v35, %v2910_v11  ;;  %v3073_v60 = vmax.f32 %v3025_v12, 0.0 }
 0x43b   : > { %v3082_v41 = vmax.f32 %v3034_v51, 0.0 }
 0x43c   : > { %v3076_v0 = vmax.f32 %v3028_v17, 0.0 }
 0x43d   : > { %v5228_v1 = vpack.c.bf16 %v3082_v41, %v3079_v18 }
 0x43e   : > { %v5230_v7 = vpack.c.bf16 %v3076_v0, %v3073_v60 }
 0x45d   : > { %v2746_v35 = vpop.f32.mrb[64].mxu0 }
 0x45e   : > { %v2987_v54 = vadd.f32 %v5236_v19, %v2746_v35  ;;  %v2748_v13 = vpop.f32.mrb[65].mxu0 }
 0x45f   : > { %v2988_v50 = vadd.f32 %v5239_v52, %v2748_v13  ;;  %v2750_v46 = vpop.f32.mrb[66].mxu0 }
 0x460   : > { %v2990_v2 = vadd.f32 %v5236_v19, %v2750_v46  ;;  %v2752_v53 = vpop.f32.mrb[67].mxu0  ;;  %v3035_v27 = vmax.f32 %v2987_v54, 0.0 }
 0x461   : > { %v2991_v34 = vadd.f32 %v5239_v52, %v2752_v53  ;;  %v3036_v10 = vmax.f32 %v2988_v50, 0.0 }
 0x462   : > { %v3038_v40 = vmax.f32 %v2990_v2, 0.0 }
 0x463   : > { %v3039_v29 = vmax.f32 %v2991_v34, 0.0 }
 0x464   : > { %v3085_v32 = vpack.c.bf16 %v3038_v40, %v3035_v27 }
 0x465   : > { %v3086_v33 = vpack.c.bf16 %v3039_v29, %v3036_v10  ;;  %v2756_v3 = vpop.f32.mrb[68].mxu0 }
 0x466   : > { %v2993_v36 = vadd.f32 %v5236_v19, %v2756_v3  ;;  %v2758_v49 = vpop.f32.mrb[69].mxu0 }
 0x467   : > { %v2994_v42 = vadd.f32 %v5239_v52, %v2758_v49  ;;  %v2760_v43 = vpop.f32.mrb[70].mxu0  ;;  %3127 = vmatprep.subr.bf16.mxu1 %v3086_v33 }
 0x468   : > { %v2996_v63 = vadd.f32 %v5236_v19, %v2760_v43  ;;  %v2762_v30 = vpop.f32.mrb[71].mxu0  ;;  %3128 = vmatpush1.bf16.xpose.msra.mxu1 %v3085_v32  ;;  %v3041_v6 = vmax.f32 %v2993_v36, 0.0 }
 0x469   : > { %v2997_v56 = vadd.f32 %v5239_v52, %v2762_v30  ;;  %v3042_v14 = vmax.f32 %v2994_v42, 0.0 }
 0x46a   : > { %v3044_v5 = vmax.f32 %v2996_v63, 0.0 }
 0x46b   : > { %v3045_v21 = vmax.f32 %v2997_v56, 0.0 }
 0x46c   : > { %v3088_v44 = vpack.c.bf16 %v3044_v5, %v3041_v6 }
 0x46d   : > { %v3089_v38 = vpack.c.bf16 %v3045_v21, %v3042_v14  ;;  %v2766_v47 = vpop.f32.mrb[72].mxu0 }
 0x46e   : > { %v2999_v57 = vadd.f32 %v5236_v19, %v2766_v47  ;;  %v2768_v58 = vpop.f32.mrb[73].mxu0 }
 0x46f   : > { %v3000_v23 = vadd.f32 %v5239_v52, %v2768_v58  ;;  %v2770_v24 = vpop.f32.mrb[74].mxu0  ;;  %3129 = vmatprep.subr.bf16.mxu1 %v3089_v38 }
 0x470   : > { %v3002_v25 = vadd.f32 %v5236_v19, %v2770_v24  ;;  %v2772_v45 = vpop.f32.mrb[75].mxu0  ;;  %3130 = vmatpush1.bf16.xpose.msra.mxu1 %v3088_v44  ;;  %v3047_v48 = vmax.f32 %v2999_v57, 0.0 }
 0x471   : > { %v3003_v28 = vadd.f32 %v5239_v52, %v2772_v45  ;;  %v3048_v16 = vmax.f32 %v3000_v23, 0.0 }
 0x472   : > { %v3050_v20 = vmax.f32 %v3002_v25, 0.0 }
 0x473   : > { %v3051_v61 = vmax.f32 %v3003_v28, 0.0 }
 0x474   : > { %v3091_v9 = vpack.c.bf16 %v3050_v20, %v3047_v48 }
 0x475   : > { %v3092_v12 = vpack.c.bf16 %v3051_v61, %v3048_v16  ;;  %v2776_v37 = vpop.f32.mrb[76].mxu0 }
 0x476   : > { %v3005_v51 = vadd.f32 %v5236_v19, %v2776_v37  ;;  %v2778_v11 = vpop.f32.mrb[77].mxu0 }
 0x477   : > { %v3006_v17 = vadd.f32 %v5239_v52, %v2778_v11  ;;  %v2780_v18 = vpop.f32.mrb[78].mxu0  ;;  %3131 = vmatprep.subr.bf16.mxu1 %v3092_v12 }
 0x478   : > { %v3008_v41 = vadd.f32 %v5236_v19, %v2780_v18  ;;  %v2782_v60 = vpop.f32.mrb[79].mxu0  ;;  %3132 = vmatpush1.bf16.xpose.msra.mxu1 %v3091_v9  ;;  %v3053_v8 = vmax.f32 %v3005_v51, 0.0 }
 0x479   : > { %v3009_v0 = vadd.f32 %v5239_v52, %v2782_v60  ;;  %v3054_v4 = vmax.f32 %v3006_v17, 0.0 }
 0x47a   : > { %v3056_v31 = vmax.f32 %v3008_v41, 0.0 }
 0x47b   : > { %v3057_v35 = vmax.f32 %v3009_v0, 0.0 }
 0x47c   : > { %v3094_v54 = vpack.c.bf16 %v3056_v31, %v3053_v8 }
 0x47d   : > { %v3095_v13 = vpack.c.bf16 %v3057_v35, %v3054_v4  ;;  %v2786_v50 = vpop.f32.mrb[80].mxu0 }
 0x47e   : > { %v3011_v46 = vadd.f32 %v5236_v19, %v2786_v50  ;;  %v2788_v2 = vpop.f32.mrb[81].mxu0 }
 0x47f   : > { %v3012_v53 = vadd.f32 %v5239_v52, %v2788_v2  ;;  %v2790_v34 = vpop.f32.mrb[82].mxu0  ;;  %3133 = vmatprep.subr.bf16.mxu1 %v3095_v13 }
 0x480   : > { %v3014_v27 = vadd.f32 %v5236_v19, %v2790_v34  ;;  %v2792_v40 = vpop.f32.mrb[83].mxu0  ;;  %3134 = vmatpush1.bf16.xpose.msra.mxu1 %v3094_v54  ;;  %v3059_v29 = vmax.f32 %v3011_v46, 0.0  ;;  %v3468_v34 = vcombine.low %v5212_v39, %v5212_v39  ;;  %v4156_v39 = vld [vmem:[%s5339_s6 + $0x128] ss:$0 sps:$4 sm:$0x11]  }
 0x481   : > { %v3015_v10 = vadd.f32 %v5239_v52, %v2792_v40  ;;  %v3060_v33 = vmax.f32 %v3012_v53, 0.0  ;;  %v4225_v53 = vmov 0.0  }
 0x482   : > { %v3062_v32 = vmax.f32 %v3014_v27, 0.0 }
 0x483   : > { %v3063_v3 = vmax.f32 %v3015_v10, 0.0 }
 0x484   : > { %v3097_v36 = vpack.c.bf16 %v3062_v32, %v3059_v29 }
 0x485   : > { %v3098_v49 = vpack.c.bf16 %v3063_v3, %v3060_v33  ;;  %v2796_v42 = vpop.f32.mrb[84].mxu0 }
 0x486   : > { %v3017_v43 = vadd.f32 %v5236_v19, %v2796_v42  ;;  %v2798_v63 = vpop.f32.mrb[85].mxu0 }
 0x487   : > { %v3018_v30 = vadd.f32 %v5239_v52, %v2798_v63  ;;  %v2800_v56 = vpop.f32.mrb[86].mxu0  ;;  %3135 = vmatprep.subr.bf16.mxu1 %v3098_v49 }
 0x488   : > { %v3020_v6 = vadd.f32 %v5236_v19, %v2800_v56  ;;  %v2802_v5 = vpop.f32.mrb[87].mxu0  ;;  %3136 = vmatpush1.bf16.xpose.msra.mxu1 %v3097_v36  ;;  %v3065_v21 = vmax.f32 %v3017_v43, 0.0 }
 0x489   : > { %v3021_v14 = vadd.f32 %v5239_v52, %v2802_v5  ;;  %v3066_v38 = vmax.f32 %v3018_v30, 0.0 }
 0x48a   : > { %v3068_v44 = vmax.f32 %v3020_v6, 0.0 }
 0x48b   : > { %v3069_v47 = vmax.f32 %v3021_v14, 0.0 }
 0x48c   : > { %v3100_v57 = vpack.c.bf16 %v3068_v44, %v3065_v21 }
 0x48d   : > { %v3101_v58 = vpack.c.bf16 %v3069_v47, %v3066_v38  ;;  %v2806_v23 = vpop.f32.mrb[88].mxu0 }
 0x48e   : > { %v3023_v24 = vadd.f32 %v5236_v19, %v2806_v23  ;;  %v2808_v25 = vpop.f32.mrb[89].mxu0 }
 0x48f   : > { %v3024_v45 = vadd.f32 %v5239_v52, %v2808_v25  ;;  %v2810_v28 = vpop.f32.mrb[90].mxu0  ;;  %3137 = vmatprep.subr.bf16.mxu1 %v3101_v58 }
 0x490   : > { %v3026_v48 = vadd.f32 %v5236_v19, %v2810_v28  ;;  %v2812_v20 = vpop.f32.mrb[91].mxu0  ;;  %3138 = vmatpush1.bf16.xpose.msra.mxu1 %v3100_v57  ;;  %v3071_v61 = vmax.f32 %v3023_v24, 0.0 }
 0x491   : > { %v3027_v16 = vadd.f32 %v5239_v52, %v2812_v20  ;;  %v3072_v12 = vmax.f32 %v3024_v45, 0.0 }
 0x492   : > { %v3074_v9 = vmax.f32 %v3026_v48, 0.0 }
 0x493   : > { %v3075_v37 = vmax.f32 %v3027_v16, 0.0 }
 0x494   : > { %v3103_v51 = vpack.c.bf16 %v3074_v9, %v3071_v61 }
 0x495   : > { %v3104_v11 = vpack.c.bf16 %v3075_v37, %v3072_v12  ;;  %v2816_v17 = vpop.f32.mrb[92].mxu0 }
 0x496   : > { %v3029_v18 = vadd.f32 %v5236_v19, %v2816_v17  ;;  %v2818_v41 = vpop.f32.mrb[93].mxu0 }
 0x497   : > { %v3030_v60 = vadd.f32 %v5239_v52, %v2818_v41  ;;  %v2820_v0 = vpop.f32.mrb[94].mxu0  ;;  %3139 = vmatprep.subr.bf16.mxu1 %v3104_v11 }
 0x498   : > { %v3032_v8 = vadd.f32 %v5236_v19, %v2820_v0  ;;  %v2822_v31 = vpop.f32.mrb[95].mxu0  ;;  %3140 = vmatpush1.bf16.xpose.msra.mxu1 %v3103_v51  ;;  %v3077_v35 = vmax.f32 %v3029_v18, 0.0 }
 0x499   : > { %v3033_v4 = vadd.f32 %v5239_v52, %v2822_v31  ;;  %v3078_v13 = vmax.f32 %v3030_v60, 0.0 }
 0x49a   : > { %v3080_v54 = vmax.f32 %v3032_v8, 0.0 }
 0x49b   : > { %v3081_v50 = vmax.f32 %v3033_v4, 0.0 }
 0x49c   : > { %v3106_v46 = vpack.c.bf16 %v3080_v54, %v3077_v35 }
 0x49d   : > { %v3107_v2 = vpack.c.bf16 %v3081_v50, %v3078_v13 }
 0x49f   : > { %3141 = vmatprep.subr.bf16.mxu1 %v3107_v2 }
 0x4a0   : > { %3142 = vmatpush1.bf16.xpose.msra.mxu1 %v3106_v46 }
 0x4a1   : > { %3690 = vmatprep.subr.bf16.mxu1 %v4225_v53 }
 0x4a7   : > { %3160 = vmatmul.mubr.bf16.vlgmr.msra.gmra.mrb[80].mxu1 %v3468_v34 }
 0x4a8   : > { %3691 = vmatpush3.bf16.xpose.msra.mxu1 %v5218_v26  ;;  %3706 = vmatprep.mubr.msk.bf16.mxu1 %vm4226_vm3, %v4225_v53 }
 0x4a9   : > { %3692 = vmatprep.subr.bf16.mxu1 %v4225_v53 }
 0x4b0   : > { %3693 = vmatpush3.bf16.xpose.msra.mxu1 %v5216_v22  ;;  %v3114_v22 = vpop.permute.xlu1 %3113 }
 0x4b1   : > { %3694 = vmatprep.subr.bf16.mxu1 %v4225_v53 }
 0x4b8   : > { %3695 = vmatpush3.bf16.xpose.msra.mxu1 %v5222_v62 }
 0x4b9   : > { %3696 = vmatprep.subr.bf16.mxu1 %v4225_v53 }
 0x4c0   : > { %3697 = vmatpush3.bf16.xpose.msra.mxu1 %v5220_v55 }
 0x4c1   : > { %3698 = vmatprep.subr.bf16.mxu1 %v4225_v53 }
 0x4c8   : > { %3699 = vmatpush3.bf16.xpose.msra.mxu1 %v5226_v59 }
 0x4c9   : > { %3700 = vmatprep.subr.bf16.mxu1 %v4225_v53 }
 0x4d0   : > { %3701 = vmatpush3.bf16.xpose.msra.mxu1 %v5224_v15 }
 0x4d1   : > { %3702 = vmatprep.subr.bf16.mxu1 %v4225_v53 }
 0x4d8   : > { %3703 = vmatpush3.bf16.xpose.msra.mxu1 %v5230_v7 }
 0x4d9   : > { %3704 = vmatprep.subr.bf16.mxu1 %v4225_v53 }
 0x4e0   : > { %3705 = vmatpush3.bf16.xpose.msra.mxu1 %v5228_v1 }
 0x4e7   : > { %3707 = vmatmul.mubr.bf16.vlgmr.msra.gmra.mrb[80].mxu1 %v4156_v39 }
 0x5ba   : > { %v3201_v26 = vpop.f32.mrb[80].mxu1 }
 0x5bb   : > { %v3710_v55 = vadd.f32 %v3201_v26, %v3114_v22  ;;  %v3708_v62 = vpop.f32.mrb[81].mxu1 }
 0x5bc   : > { %v3204_v15 = vpop.f32.mrb[82].mxu1 }
 0x5bd   : > { %3207 = vst [vmem:[%s303_s14] sm:$0x1] %v3710_v55  ;;  %v3709_v59 = vpop.f32.mrb[83].mxu1 }
 0x5be   : > { %4170 = shalt.err (!%p4167_p3)
}
 0x5bf   : > { %s4171_s15 = scalar_lea.hbm %s5291_s29, 16  ;;  %s4175_s9 = scalar_lea.hbm %s5340_s7, 32 }
 0x5c0   : > { %p4172_p4 = scmp.ne.s32.totalorder %s5291_s29, %s4171_s15  ;;  %p4176_p9 = scmp.lt.u32.totalorder %s5291_s29, %s5340_s7 }
 0x5c1   : > { %p4177_p10 = scmp.lt.u32.totalorder %s4175_s9, %s4171_s15  ;;  %p4179_p12 = scmp.lt.u32.totalorder %s4171_s15, %s5291_s29 }
 0x5c2   : > { %p4173_p7 = pnand %p4172_p4, %p4303_p5 }
 0x5c3   : > { %p4178_p11 = por %p4177_p10, %p4176_p9 }
 0x5c4   : > { %p4174_p8 = pneg %p4173_p7 }
 0x5c5   : > { %p4180_p13 = por %p4179_p12, %p4178_p11 }
 0x5c7   : > { %p4181_p0 = pnand %p4180_p13, %p4174_p8 }
 0x5c9   : > { %4184 = shalt.err (!%p4181_p0)
}
 0x5ca   : > { %3811 = dma.vmem_to_hbm [thread:$0]  (%p4303_p5), %s5293_s22, 16, %s5291_s29, %s3209_s17  }
 0x5cb PF: > { %p3817_p1 = scmp.ge.s32.totalorder %s4219_s27, 2  ;;  %s3233_s16 = sand.u32 1, %s4207_s24  }
 0x5cc   : > { %s3234_s18 = scalar_lea.sflag [#allocation3], %s3233_s16 }
 0x5cd   : > { %p3814_p2 = pnand %p3817_p1, %p4307_p6 }
 0x5cf   : > { %4202 = dma.done.wait (!%p3814_p2), %s3234_s18, 16  }
 0x5d0   : > { %4204 = vsyncadd (!%p3814_p2), %s3234_s18, 4294967280  ;;  %p17_p3 = scmp.ge.s32.totalorder %s4291_s30, 4   ;;  %s5343_s24 = smov %s4211_s25 }
 0x5d1   : > { %s5344_s25 = smov %s4215_s26  ;;  %s5345_s26 = smov %s4301_s10 }
 0x5d2   : > { %s5346_s27 = smov %s4291_s30  ;;  %19 = sbr.rel (!%p17_p3) target bundleno = 3 (0x3), region = 89 }
 0x5d9   :  { %3238 = vsyncpa [#allocation3], 1 }
 0x5da   :  { %3240 = vsyncpa [#allocation3 + $0x1], 1 }

</bundles_post_ra>
